<compile_context>
chip_gen: v5e
topology: v5e:2x2
jax: 0.10.0
libtpu: 0.0.40
codegen_flags: <defaults>
</compile_context>

<pallas_src>
import jax
import jax.numpy as jnp
from jax.experimental import pallas as pl
from jax.experimental.pallas import tpu as pltpu

BN_EPS = 1e-5
_HIGHEST = jax.lax.Precision.HIGHEST


# ----------------------------- Pallas kernel --------------------------------

def _make_moenet_kernel(*, L, K, nhid, B, nfield, nemb):
    """Fused forward kernel: embedding gather + L MOE layers + final linear.

    Ref layout (positional):
      refs[0]                 x_id       (B, nfield) int32        [SMEM]
      refs[1]                 emb table  (nfeat, 1, nemb)         [VMEM]
      refs[2]                 aw_wide    (L, B, K*nhid)           [VMEM]
      refs[3+4l .. 6+4l]      layer l:   w_packed, b_wide, gamma_wide, beta_wide
      refs[3+4L], refs[4+4L]  w_out_rep (K*nhid, nout), b_out (1, nout)
      refs[5+4L]              output     (B, nout)
      refs[6+4L]              h0 scratch (B, nfield*nemb)         [VMEM]
    """

    def kernel(*refs):
        x_id_ref, emb_ref, aw_ref = refs[0], refs[1], refs[2]
        w_out_ref = refs[3 + 4 * L]
        b_out_ref = refs[4 + 4 * L]
        o_ref = refs[5 + 4 * L]
        h0_ref = refs[6 + 4 * L]

        # --- fused embedding gather: h0[b, f*nemb:(f+1)*nemb] = emb[x_id[b,f]] ---
        # Scalar ids read from SMEM; each row is a dynamic leading-dim VMEM load.
        for b in range(B):                      # statically unrolled (B*nfield tiny)
            for f in range(nfield):
                idx = x_id_ref[b, f]
                h0_ref[pl.ds(b, 1), pl.ds(f * nemb, nemb)] = emb_ref[idx]

        h = h0_ref[...]                          # (B, nfield*nemb) f32
        inv_b = 1.0 / B

        for l in range(L):                       # statically unrolled layer stack
            base = 3 + 4 * l
            w_ref, b_ref, g_ref, bt_ref = refs[base:base + 4]

            # One wide matmul covers all K experts; for l > 0 the expert-sum of
            # the previous layer is already folded into w_ref (rows tiled K x).
            z = jnp.dot(h, w_ref[...], preferred_element_type=jnp.float32,
                        precision=_HIGHEST)
            z = z + b_ref[...]

            # BatchNorm1d, training-mode batch stats (biased variance), one pass.
            s1 = jnp.sum(z, axis=0, keepdims=True)
            s2 = jnp.sum(z * z, axis=0, keepdims=True)
            mean = s1 * inv_b
            var = jnp.maximum(s2 * inv_b - mean * mean, 0.0)
            scale = g_ref[...] * jax.lax.rsqrt(var + BN_EPS)
            shift = bt_ref[...] - mean * scale
            z = z * scale + shift

            # ReLU + per-expert weighting (lane-dense multiply); the sum over
            # experts is folded into the next tiled matmul / tiled w_out.
            h = jnp.maximum(z, 0.0) * aw_ref[l]

        # Fused final linear epilogue: (B, K*nhid) @ (K*nhid, nout) + b
        o_ref[...] = (
            jnp.dot(h, w_out_ref[...], preferred_element_type=jnp.float32,
                    precision=_HIGHEST)
            + b_out_ref[...]
        )

    return kernel


# ------------------------- one-time weight packing ---------------------------

def pack_params(params):
    """Pack torch-layout params ONCE into the kernel-resident layout.

    Done outside the jitted forward so no per-call transpose/reshape/tile ops
    remain. Returns (packed, K, nhid).
    """
    moe_layers = params["moe_layers"]
    K, _, nhid = moe_layers[0]["w"].shape

    layers = []
    for i, lp in enumerate(moe_layers):
        Ki, nin_i, nhid_i = lp["w"].shape
        # (K, nin, nhid) -> (nin, K*nhid): column block k is expert k's weight.
        w = jnp.transpose(lp["w"], (1, 0, 2)).reshape(nin_i, Ki * nhid_i)
        if i > 0:
            # Fold the previous layer's sum-over-experts into this contraction:
            # every previous expert block sees the same weight rows.
            w = jnp.tile(w, (Ki, 1))                       # (K*nhid, K*nhid)
        layers.append(dict(
            w=w.astype(jnp.float32),
            b=lp["b"].reshape(1, Ki * nhid_i).astype(jnp.float32),
            gamma=lp["gamma"].reshape(1, Ki * nhid_i).astype(jnp.float32),
            beta=lp["beta"].reshape(1, Ki * nhid_i).astype(jnp.float32),
        ))

    nfeat, nemb = params["emb"].shape
    nout = params["w_out"].shape[1]
    packed = dict(
        # (nfeat, 1, nemb): the in-kernel gather indexes the untiled leading dim.
        emb=params["emb"].reshape(nfeat, 1, nemb).astype(jnp.float32),
        layers=layers,
        w_out=jnp.tile(params["w_out"], (K, 1)).astype(jnp.float32),  # (K*nhid, nout)
        b_out=params["b_out"].reshape(1, nout).astype(jnp.float32),
    )
    return packed, K, nhid


# ------------------------------ forward wrapper -------------------------------

def moenet_forward(packed, x_id, arch_weights=None, *, K, nhid):
    """x_id: (B, nfield) int32 ids; arch_weights: (B, L, K) or None. Returns (B,)."""
    B, nfield = x_id.shape
    layers = packed["layers"]
    L = len(layers)
    nemb = packed["emb"].shape[2]
    nout = packed["w_out"].shape[1]
    nin0 = nfield * nemb

    # Lane-dense per-layer expert weights (L, B, K*nhid): covers both the mean
    # combine (1/K everywhere) and the arch-weight bmm combine.
    if arch_weights is None:
        aw_wide = jnp.full((L, B, K * nhid), 1.0 / K, dtype=jnp.float32)
    else:
        aw_wide = jnp.repeat(
            jnp.transpose(arch_weights.astype(jnp.float32), (1, 0, 2)), nhid, axis=2)

    inputs = [x_id.astype(jnp.int32), packed["emb"], aw_wide]
    for lp in layers:
        inputs += [lp["w"], lp["b"], lp["gamma"], lp["beta"]]
    inputs += [packed["w_out"], packed["b_out"]]

    smem = pl.BlockSpec(memory_space=pltpu.MemorySpace.SMEM)
    vmem = pl.BlockSpec(memory_space=pltpu.MemorySpace.VMEM)

    y = pl.pallas_call(
        _make_moenet_kernel(L=L, K=K, nhid=nhid, B=B, nfield=nfield, nemb=nemb),
        out_shape=jax.ShapeDtypeStruct((B, nout), jnp.float32),
        in_specs=[smem] + [vmem] * (len(inputs) - 1),
        out_specs=vmem,
        scratch_shapes=[pltpu.VMEM((B, nin0), jnp.float32)],
        compiler_params=pltpu.CompilerParams(vmem_limit_bytes=32 * 1024 * 1024),
    )(*inputs)
    return y[:, 0]                                        # .squeeze(1)


# ------------------------------ init & reference ------------------------------

def init_params(key, nfield, nfeat, nemb, nlayers, nhid, K, noutput=1):
    keys = jax.random.split(key, 2 + 4 * nlayers)
    bound = (6.0 / (nfeat + nemb)) ** 0.5                 # xavier_uniform
    emb = jax.random.uniform(keys[0], (nfeat, nemb), jnp.float32, -bound, bound)

    moe_layers = []
    nin = nfield * nemb
    for i in range(nlayers):
        kw, kb = keys[2 + 2 * i], keys[3 + 2 * i]
        lim = 1.0 / (nin ** 0.5)
        w = jax.random.uniform(kw, (K, nin, nhid), jnp.float32, -lim, lim)
        b = jax.random.uniform(kb, (K, nhid), jnp.float32, -lim, lim)
        gamma = jnp.ones((K, nhid), jnp.float32)
        beta = jnp.zeros((K, nhid), jnp.float32)
        moe_layers.append(dict(w=w, b=b, gamma=gamma, beta=beta))
        nin = nhid

    lim = 1.0 / (nhid ** 0.5)
    w_out = jax.random.uniform(keys[1], (nhid, noutput), jnp.float32, -lim, lim)
    b_out = jnp.zeros((noutput,), jnp.float32)
    return dict(emb=emb, moe_layers=moe_layers, w_out=w_out, b_out=b_out)


def moenet_reference(params, x_id, arch_weights=None):
    """Pure-JAX reference mirroring the torch forward (for validation)."""
    emb = jnp.take(params["emb"], x_id, axis=0)
    B = x_id.shape[0]
    h = emb.reshape(B, -1).astype(jnp.float32)
    for i, lp in enumerate(params["moe_layers"]):
        K = lp["w"].shape[0]
        outs = []
        for k in range(K):
            z = jnp.dot(h, lp["w"][k], precision=_HIGHEST) + lp["b"][k]
            mean = jnp.mean(z, axis=0, keepdims=True)
            var = jnp.mean(jnp.square(z - mean), axis=0, keepdims=True)
            z = (z - mean) / jnp.sqrt(var + BN_EPS)
            z = z * lp["gamma"][k] + lp["beta"][k]
            outs.append(jnp.maximum(z, 0.0))
        stacked = jnp.stack(outs, axis=1)                 # (B, K, nhid)
        if arch_weights is None:
            h = jnp.mean(stacked, axis=1)
        else:
            aw = arch_weights[:, i, :][:, None, :]        # (B, 1, K)
            h = jnp.einsum("bok,bkh->boh", aw, stacked, precision=_HIGHEST)[:, 0, :]
    y = jnp.dot(h, params["w_out"], precision=_HIGHEST) + params["b_out"]
    return y[:, 0]


# --------------------------------- main ---------------------------------------

if __name__ == "__main__":
    # Small config: B=8, nfield=4, nemb=8 -> moe_mlp_ninput=32, nhid=32, L=2, K=3
    B, nfield, nfeat, nemb = 8, 4, 20, 8
    nlayers, nhid, K = 2, 32, 3

    key = jax.random.PRNGKey(0)
    kp, kx, ka = jax.random.split(key, 3)

    params = init_params(kp, nfield, nfeat, nemb, nlayers, nhid, K)
    packed, Kp, nhidp = pack_params(params)               # one-time packing

    x_id = jax.random.randint(kx, (B, nfield), 0, nfeat, dtype=jnp.int32)
    arch_weights = jax.nn.softmax(
        jax.random.normal(ka, (B, nlayers, K), jnp.float32), axis=-1)

    fwd = jax.jit(lambda p, xid, aw: moenet_forward(p, xid, aw, K=Kp, nhid=nhidp))

    # arch-weighted path (bmm combine) and arch_weights=None path (mean combine)
    y_w = jax.block_until_ready(fwd(packed, x_id, arch_weights))
    y_m = jax.block_until_ready(fwd(packed, x_id, None))

    ref_w = moenet_reference(params, x_id, arch_weights)
    ref_m = moenet_reference(params, x_id, None)

    assert y_w.shape == (B,) and y_m.shape == (B,)
    assert jnp.allclose(y_w, ref_w, rtol=1e-3, atol=1e-4), (y_w, ref_w)
    assert jnp.allclose(y_m, ref_m, rtol=1e-3, atol=1e-4), (y_m, ref_m)

    print("KERNEL_OK")
</pallas_src>

<mosaic_0001>
module attributes {stable_mosaic.version = 11 : i64} {
  func.func @kernel(%arg0: memref<8x4xi32, #tpu.memory_space<smem>>, %arg1: memref<20x1x8xf32, #tpu.memory_space<vmem>>, %arg2: memref<2x8x96xf32, #tpu.memory_space<vmem>>, %arg3: memref<32x96xf32, #tpu.memory_space<vmem>>, %arg4: memref<1x96xf32, #tpu.memory_space<vmem>>, %arg5: memref<1x96xf32, #tpu.memory_space<vmem>>, %arg6: memref<1x96xf32, #tpu.memory_space<vmem>>, %arg7: memref<96x96xf32, #tpu.memory_space<vmem>>, %arg8: memref<1x96xf32, #tpu.memory_space<vmem>>, %arg9: memref<1x96xf32, #tpu.memory_space<vmem>>, %arg10: memref<1x96xf32, #tpu.memory_space<vmem>>, %arg11: memref<96x1xf32, #tpu.memory_space<vmem>>, %arg12: memref<1x1xf32, #tpu.memory_space<vmem>>, %arg13: memref<8x1xf32, #tpu.memory_space<vmem>>, %arg14: memref<8x32xf32, #tpu.memory_space<vmem>>) attributes {dimension_semantics = [], scalar_prefetch = 0 : i64, scratch_operands = 1 : i64, tpu.core_type = #tpu.core_type<tc>} {
    %c0 = arith.constant 0 : index
    %c0_0 = arith.constant 0 : index
    %0 = memref.load %arg0[%c0, %c0_0] : memref<8x4xi32, #tpu.memory_space<smem>>
    %1 = arith.index_cast %0 : i32 to index
    %c0_1 = arith.constant 0 : index
    %c0_2 = arith.constant 0 : index
    %2 = vector.load %arg1[%1, %c0_1, %c0_2] : memref<20x1x8xf32, #tpu.memory_space<vmem>>, vector<1x1x8xf32>
    %3 = vector.shape_cast %2 : vector<1x1x8xf32> to vector<1x8xf32>
    %c0_3 = arith.constant 0 : index
    %c0_4 = arith.constant 0 : index
    %4 = vector.load %arg14[%c0_3, %c0_4] : memref<8x32xf32, #tpu.memory_space<vmem>>, vector<1x8xf32>
    tpu.vector_store %arg14[%c0_3, %c0_4], %3 {strides = array<i32>} : memref<8x32xf32, #tpu.memory_space<vmem>>, vector<1x8xf32>,
    %c0_5 = arith.constant 0 : index
    %c1 = arith.constant 1 : index
    %5 = memref.load %arg0[%c0_5, %c1] : memref<8x4xi32, #tpu.memory_space<smem>>
    %6 = arith.index_cast %5 : i32 to index
    %c0_6 = arith.constant 0 : index
    %c0_7 = arith.constant 0 : index
    %7 = vector.load %arg1[%6, %c0_6, %c0_7] : memref<20x1x8xf32, #tpu.memory_space<vmem>>, vector<1x1x8xf32>
    %8 = vector.shape_cast %7 : vector<1x1x8xf32> to vector<1x8xf32>
    %c0_8 = arith.constant 0 : index
    %c8 = arith.constant 8 : index
    %9 = vector.load %arg14[%c0_8, %c8] : memref<8x32xf32, #tpu.memory_space<vmem>>, vector<1x8xf32>
    tpu.vector_store %arg14[%c0_8, %c8], %8 {strides = array<i32>} : memref<8x32xf32, #tpu.memory_space<vmem>>, vector<1x8xf32>,
    %c0_9 = arith.constant 0 : index
    %c2 = arith.constant 2 : index
    %10 = memref.load %arg0[%c0_9, %c2] : memref<8x4xi32, #tpu.memory_space<smem>>
    %11 = arith.index_cast %10 : i32 to index
    %c0_10 = arith.constant 0 : index
    %c0_11 = arith.constant 0 : index
    %12 = vector.load %arg1[%11, %c0_10, %c0_11] : memref<20x1x8xf32, #tpu.memory_space<vmem>>, vector<1x1x8xf32>
    %13 = vector.shape_cast %12 : vector<1x1x8xf32> to vector<1x8xf32>
    %c0_12 = arith.constant 0 : index
    %c16 = arith.constant 16 : index
    %14 = vector.load %arg14[%c0_12, %c16] : memref<8x32xf32, #tpu.memory_space<vmem>>, vector<1x8xf32>
    tpu.vector_store %arg14[%c0_12, %c16], %13 {strides = array<i32>} : memref<8x32xf32, #tpu.memory_space<vmem>>, vector<1x8xf32>,
    %c0_13 = arith.constant 0 : index
    %c3 = arith.constant 3 : index
    %15 = memref.load %arg0[%c0_13, %c3] : memref<8x4xi32, #tpu.memory_space<smem>>
    %16 = arith.index_cast %15 : i32 to index
    %c0_14 = arith.constant 0 : index
    %c0_15 = arith.constant 0 : index
    %17 = vector.load %arg1[%16, %c0_14, %c0_15] : memref<20x1x8xf32, #tpu.memory_space<vmem>>, vector<1x1x8xf32>
    %18 = vector.shape_cast %17 : vector<1x1x8xf32> to vector<1x8xf32>
    %c0_16 = arith.constant 0 : index
    %c24 = arith.constant 24 : index
    %19 = vector.load %arg14[%c0_16, %c24] : memref<8x32xf32, #tpu.memory_space<vmem>>, vector<1x8xf32>
    tpu.vector_store %arg14[%c0_16, %c24], %18 {strides = array<i32>} : memref<8x32xf32, #tpu.memory_space<vmem>>, vector<1x8xf32>,
    %c1_17 = arith.constant 1 : index
    %c0_18 = arith.constant 0 : index
    %20 = memref.load %arg0[%c1_17, %c0_18] : memref<8x4xi32, #tpu.memory_space<smem>>
    %21 = arith.index_cast %20 : i32 to index
    %c0_19 = arith.constant 0 : index
    %c0_20 = arith.constant 0 : index
    %22 = vector.load %arg1[%21, %c0_19, %c0_20] : memref<20x1x8xf32, #tpu.memory_space<vmem>>, vector<1x1x8xf32>
    %23 = vector.shape_cast %22 : vector<1x1x8xf32> to vector<1x8xf32>
    %c1_21 = arith.constant 1 : index
    %c0_22 = arith.constant 0 : index
    %24 = vector.load %arg14[%c1_21, %c0_22] : memref<8x32xf32, #tpu.memory_space<vmem>>, vector<1x8xf32>
    tpu.vector_store %arg14[%c1_21, %c0_22], %23 {strides = array<i32>} : memref<8x32xf32, #tpu.memory_space<vmem>>, vector<1x8xf32>,
    %c1_23 = arith.constant 1 : index
    %c1_24 = arith.constant 1 : index
    %25 = memref.load %arg0[%c1_23, %c1_24] : memref<8x4xi32, #tpu.memory_space<smem>>
    %26 = arith.index_cast %25 : i32 to index
    %c0_25 = arith.constant 0 : index
    %c0_26 = arith.constant 0 : index
    %27 = vector.load %arg1[%26, %c0_25, %c0_26] : memref<20x1x8xf32, #tpu.memory_space<vmem>>, vector<1x1x8xf32>
    %28 = vector.shape_cast %27 : vector<1x1x8xf32> to vector<1x8xf32>
    %c1_27 = arith.constant 1 : index
    %c8_28 = arith.constant 8 : index
    %29 = vector.load %arg14[%c1_27, %c8_28] : memref<8x32xf32, #tpu.memory_space<vmem>>, vector<1x8xf32>
    tpu.vector_store %arg14[%c1_27, %c8_28], %28 {strides = array<i32>} : memref<8x32xf32, #tpu.memory_space<vmem>>, vector<1x8xf32>,
    %c1_29 = arith.constant 1 : index
    %c2_30 = arith.constant 2 : index
    %30 = memref.load %arg0[%c1_29, %c2_30] : memref<8x4xi32, #tpu.memory_space<smem>>
    %31 = arith.index_cast %30 : i32 to index
    %c0_31 = arith.constant 0 : index
    %c0_32 = arith.constant 0 : index
    %32 = vector.load %arg1[%31, %c0_31, %c0_32] : memref<20x1x8xf32, #tpu.memory_space<vmem>>, vector<1x1x8xf32>
    %33 = vector.shape_cast %32 : vector<1x1x8xf32> to vector<1x8xf32>
    %c1_33 = arith.constant 1 : index
    %c16_34 = arith.constant 16 : index
    %34 = vector.load %arg14[%c1_33, %c16_34] : memref<8x32xf32, #tpu.memory_space<vmem>>, vector<1x8xf32>
    tpu.vector_store %arg14[%c1_33, %c16_34], %33 {strides = array<i32>} : memref<8x32xf32, #tpu.memory_space<vmem>>, vector<1x8xf32>,
    %c1_35 = arith.constant 1 : index
    %c3_36 = arith.constant 3 : index
    %35 = memref.load %arg0[%c1_35, %c3_36] : memref<8x4xi32, #tpu.memory_space<smem>>
    %36 = arith.index_cast %35 : i32 to index
    %c0_37 = arith.constant 0 : index
    %c0_38 = arith.constant 0 : index
    %37 = vector.load %arg1[%36, %c0_37, %c0_38] : memref<20x1x8xf32, #tpu.memory_space<vmem>>, vector<1x1x8xf32>
    %38 = vector.shape_cast %37 : vector<1x1x8xf32> to vector<1x8xf32>
    %c1_39 = arith.constant 1 : index
    %c24_40 = arith.constant 24 : index
    %39 = vector.load %arg14[%c1_39, %c24_40] : memref<8x32xf32, #tpu.memory_space<vmem>>, vector<1x8xf32>
    tpu.vector_store %arg14[%c1_39, %c24_40], %38 {strides = array<i32>} : memref<8x32xf32, #tpu.memory_space<vmem>>, vector<1x8xf32>,
    %c2_41 = arith.constant 2 : index
    %c0_42 = arith.constant 0 : index
    %40 = memref.load %arg0[%c2_41, %c0_42] : memref<8x4xi32, #tpu.memory_space<smem>>
    %41 = arith.index_cast %40 : i32 to index
    %c0_43 = arith.constant 0 : index
    %c0_44 = arith.constant 0 : index
    %42 = vector.load %arg1[%41, %c0_43, %c0_44] : memref<20x1x8xf32, #tpu.memory_space<vmem>>, vector<1x1x8xf32>
    %43 = vector.shape_cast %42 : vector<1x1x8xf32> to vector<1x8xf32>
    %c2_45 = arith.constant 2 : index
    %c0_46 = arith.constant 0 : index
    %44 = vector.load %arg14[%c2_45, %c0_46] : memref<8x32xf32, #tpu.memory_space<vmem>>, vector<1x8xf32>
    tpu.vector_store %arg14[%c2_45, %c0_46], %43 {strides = array<i32>} : memref<8x32xf32, #tpu.memory_space<vmem>>, vector<1x8xf32>,
    %c2_47 = arith.constant 2 : index
    %c1_48 = arith.constant 1 : index
    %45 = memref.load %arg0[%c2_47, %c1_48] : memref<8x4xi32, #tpu.memory_space<smem>>
    %46 = arith.index_cast %45 : i32 to index
    %c0_49 = arith.constant 0 : index
    %c0_50 = arith.constant 0 : index
    %47 = vector.load %arg1[%46, %c0_49, %c0_50] : memref<20x1x8xf32, #tpu.memory_space<vmem>>, vector<1x1x8xf32>
    %48 = vector.shape_cast %47 : vector<1x1x8xf32> to vector<1x8xf32>
    %c2_51 = arith.constant 2 : index
    %c8_52 = arith.constant 8 : index
    %49 = vector.load %arg14[%c2_51, %c8_52] : memref<8x32xf32, #tpu.memory_space<vmem>>, vector<1x8xf32>
    tpu.vector_store %arg14[%c2_51, %c8_52], %48 {strides = array<i32>} : memref<8x32xf32, #tpu.memory_space<vmem>>, vector<1x8xf32>,
    %c2_53 = arith.constant 2 : index
    %c2_54 = arith.constant 2 : index
    %50 = memref.load %arg0[%c2_53, %c2_54] : memref<8x4xi32, #tpu.memory_space<smem>>
    %51 = arith.index_cast %50 : i32 to index
    %c0_55 = arith.constant 0 : index
    %c0_56 = arith.constant 0 : index
    %52 = vector.load %arg1[%51, %c0_55, %c0_56] : memref<20x1x8xf32, #tpu.memory_space<vmem>>, vector<1x1x8xf32>
    %53 = vector.shape_cast %52 : vector<1x1x8xf32> to vector<1x8xf32>
    %c2_57 = arith.constant 2 : index
    %c16_58 = arith.constant 16 : index
    %54 = vector.load %arg14[%c2_57, %c16_58] : memref<8x32xf32, #tpu.memory_space<vmem>>, vector<1x8xf32>
    tpu.vector_store %arg14[%c2_57, %c16_58], %53 {strides = array<i32>} : memref<8x32xf32, #tpu.memory_space<vmem>>, vector<1x8xf32>,
    %c2_59 = arith.constant 2 : index
    %c3_60 = arith.constant 3 : index
    %55 = memref.load %arg0[%c2_59, %c3_60] : memref<8x4xi32, #tpu.memory_space<smem>>
    %56 = arith.index_cast %55 : i32 to index
    %c0_61 = arith.constant 0 : index
    %c0_62 = arith.constant 0 : index
    %57 = vector.load %arg1[%56, %c0_61, %c0_62] : memref<20x1x8xf32, #tpu.memory_space<vmem>>, vector<1x1x8xf32>
    %58 = vector.shape_cast %57 : vector<1x1x8xf32> to vector<1x8xf32>
    %c2_63 = arith.constant 2 : index
    %c24_64 = arith.constant 24 : index
    %59 = vector.load %arg14[%c2_63, %c24_64] : memref<8x32xf32, #tpu.memory_space<vmem>>, vector<1x8xf32>
    tpu.vector_store %arg14[%c2_63, %c24_64], %58 {strides = array<i32>} : memref<8x32xf32, #tpu.memory_space<vmem>>, vector<1x8xf32>,
    %c3_65 = arith.constant 3 : index
    %c0_66 = arith.constant 0 : index
    %60 = memref.load %arg0[%c3_65, %c0_66] : memref<8x4xi32, #tpu.memory_space<smem>>
    %61 = arith.index_cast %60 : i32 to index
    %c0_67 = arith.constant 0 : index
    %c0_68 = arith.constant 0 : index
    %62 = vector.load %arg1[%61, %c0_67, %c0_68] : memref<20x1x8xf32, #tpu.memory_space<vmem>>, vector<1x1x8xf32>
    %63 = vector.shape_cast %62 : vector<1x1x8xf32> to vector<1x8xf32>
    %c3_69 = arith.constant 3 : index
    %c0_70 = arith.constant 0 : index
    %64 = vector.load %arg14[%c3_69, %c0_70] : memref<8x32xf32, #tpu.memory_space<vmem>>, vector<1x8xf32>
    tpu.vector_store %arg14[%c3_69, %c0_70], %63 {strides = array<i32>} : memref<8x32xf32, #tpu.memory_space<vmem>>, vector<1x8xf32>,
    %c3_71 = arith.constant 3 : index
    %c1_72 = arith.constant 1 : index
    %65 = memref.load %arg0[%c3_71, %c1_72] : memref<8x4xi32, #tpu.memory_space<smem>>
    %66 = arith.index_cast %65 : i32 to index
    %c0_73 = arith.constant 0 : index
    %c0_74 = arith.constant 0 : index
    %67 = vector.load %arg1[%66, %c0_73, %c0_74] : memref<20x1x8xf32, #tpu.memory_space<vmem>>, vector<1x1x8xf32>
    %68 = vector.shape_cast %67 : vector<1x1x8xf32> to vector<1x8xf32>
    %c3_75 = arith.constant 3 : index
    %c8_76 = arith.constant 8 : index
    %69 = vector.load %arg14[%c3_75, %c8_76] : memref<8x32xf32, #tpu.memory_space<vmem>>, vector<1x8xf32>
    tpu.vector_store %arg14[%c3_75, %c8_76], %68 {strides = array<i32>} : memref<8x32xf32, #tpu.memory_space<vmem>>, vector<1x8xf32>,
    %c3_77 = arith.constant 3 : index
    %c2_78 = arith.constant 2 : index
    %70 = memref.load %arg0[%c3_77, %c2_78] : memref<8x4xi32, #tpu.memory_space<smem>>
    %71 = arith.index_cast %70 : i32 to index
    %c0_79 = arith.constant 0 : index
    %c0_80 = arith.constant 0 : index
    %72 = vector.load %arg1[%71, %c0_79, %c0_80] : memref<20x1x8xf32, #tpu.memory_space<vmem>>, vector<1x1x8xf32>
    %73 = vector.shape_cast %72 : vector<1x1x8xf32> to vector<1x8xf32>
    %c3_81 = arith.constant 3 : index
    %c16_82 = arith.constant 16 : index
    %74 = vector.load %arg14[%c3_81, %c16_82] : memref<8x32xf32, #tpu.memory_space<vmem>>, vector<1x8xf32>
    tpu.vector_store %arg14[%c3_81, %c16_82], %73 {strides = array<i32>} : memref<8x32xf32, #tpu.memory_space<vmem>>, vector<1x8xf32>,
    %c3_83 = arith.constant 3 : index
    %c3_84 = arith.constant 3 : index
    %75 = memref.load %arg0[%c3_83, %c3_84] : memref<8x4xi32, #tpu.memory_space<smem>>
    %76 = arith.index_cast %75 : i32 to index
    %c0_85 = arith.constant 0 : index
    %c0_86 = arith.constant 0 : index
    %77 = vector.load %arg1[%76, %c0_85, %c0_86] : memref<20x1x8xf32, #tpu.memory_space<vmem>>, vector<1x1x8xf32>
    %78 = vector.shape_cast %77 : vector<1x1x8xf32> to vector<1x8xf32>
    %c3_87 = arith.constant 3 : index
    %c24_88 = arith.constant 24 : index
    %79 = vector.load %arg14[%c3_87, %c24_88] : memref<8x32xf32, #tpu.memory_space<vmem>>, vector<1x8xf32>
    tpu.vector_store %arg14[%c3_87, %c24_88], %78 {strides = array<i32>} : memref<8x32xf32, #tpu.memory_space<vmem>>, vector<1x8xf32>,
    %c4 = arith.constant 4 : index
    %c0_89 = arith.constant 0 : index
    %80 = memref.load %arg0[%c4, %c0_89] : memref<8x4xi32, #tpu.memory_space<smem>>
    %81 = arith.index_cast %80 : i32 to index
    %c0_90 = arith.constant 0 : index
    %c0_91 = arith.constant 0 : index
    %82 = vector.load %arg1[%81, %c0_90, %c0_91] : memref<20x1x8xf32, #tpu.memory_space<vmem>>, vector<1x1x8xf32>
    %83 = vector.shape_cast %82 : vector<1x1x8xf32> to vector<1x8xf32>
    %c4_92 = arith.constant 4 : index
    %c0_93 = arith.constant 0 : index
    %84 = vector.load %arg14[%c4_92, %c0_93] : memref<8x32xf32, #tpu.memory_space<vmem>>, vector<1x8xf32>
    tpu.vector_store %arg14[%c4_92, %c0_93], %83 {strides = array<i32>} : memref<8x32xf32, #tpu.memory_space<vmem>>, vector<1x8xf32>,
    %c4_94 = arith.constant 4 : index
    %c1_95 = arith.constant 1 : index
    %85 = memref.load %arg0[%c4_94, %c1_95] : memref<8x4xi32, #tpu.memory_space<smem>>
    %86 = arith.index_cast %85 : i32 to index
    %c0_96 = arith.constant 0 : index
    %c0_97 = arith.constant 0 : index
    %87 = vector.load %arg1[%86, %c0_96, %c0_97] : memref<20x1x8xf32, #tpu.memory_space<vmem>>, vector<1x1x8xf32>
    %88 = vector.shape_cast %87 : vector<1x1x8xf32> to vector<1x8xf32>
    %c4_98 = arith.constant 4 : index
    %c8_99 = arith.constant 8 : index
    %89 = vector.load %arg14[%c4_98, %c8_99] : memref<8x32xf32, #tpu.memory_space<vmem>>, vector<1x8xf32>
    tpu.vector_store %arg14[%c4_98, %c8_99], %88 {strides = array<i32>} : memref<8x32xf32, #tpu.memory_space<vmem>>, vector<1x8xf32>,
    %c4_100 = arith.constant 4 : index
    %c2_101 = arith.constant 2 : index
    %90 = memref.load %arg0[%c4_100, %c2_101] : memref<8x4xi32, #tpu.memory_space<smem>>
    %91 = arith.index_cast %90 : i32 to index
    %c0_102 = arith.constant 0 : index
    %c0_103 = arith.constant 0 : index
    %92 = vector.load %arg1[%91, %c0_102, %c0_103] : memref<20x1x8xf32, #tpu.memory_space<vmem>>, vector<1x1x8xf32>
    %93 = vector.shape_cast %92 : vector<1x1x8xf32> to vector<1x8xf32>
    %c4_104 = arith.constant 4 : index
    %c16_105 = arith.constant 16 : index
    %94 = vector.load %arg14[%c4_104, %c16_105] : memref<8x32xf32, #tpu.memory_space<vmem>>, vector<1x8xf32>
    tpu.vector_store %arg14[%c4_104, %c16_105], %93 {strides = array<i32>} : memref<8x32xf32, #tpu.memory_space<vmem>>, vector<1x8xf32>,
    %c4_106 = arith.constant 4 : index
    %c3_107 = arith.constant 3 : index
    %95 = memref.load %arg0[%c4_106, %c3_107] : memref<8x4xi32, #tpu.memory_space<smem>>
    %96 = arith.index_cast %95 : i32 to index
    %c0_108 = arith.constant 0 : index
    %c0_109 = arith.constant 0 : index
    %97 = vector.load %arg1[%96, %c0_108, %c0_109] : memref<20x1x8xf32, #tpu.memory_space<vmem>>, vector<1x1x8xf32>
    %98 = vector.shape_cast %97 : vector<1x1x8xf32> to vector<1x8xf32>
    %c4_110 = arith.constant 4 : index
    %c24_111 = arith.constant 24 : index
    %99 = vector.load %arg14[%c4_110, %c24_111] : memref<8x32xf32, #tpu.memory_space<vmem>>, vector<1x8xf32>
    tpu.vector_store %arg14[%c4_110, %c24_111], %98 {strides = array<i32>} : memref<8x32xf32, #tpu.memory_space<vmem>>, vector<1x8xf32>,
    %c5 = arith.constant 5 : index
    %c0_112 = arith.constant 0 : index
    %100 = memref.load %arg0[%c5, %c0_112] : memref<8x4xi32, #tpu.memory_space<smem>>
    %101 = arith.index_cast %100 : i32 to index
    %c0_113 = arith.constant 0 : index
    %c0_114 = arith.constant 0 : index
    %102 = vector.load %arg1[%101, %c0_113, %c0_114] : memref<20x1x8xf32, #tpu.memory_space<vmem>>, vector<1x1x8xf32>
    %103 = vector.shape_cast %102 : vector<1x1x8xf32> to vector<1x8xf32>
    %c5_115 = arith.constant 5 : index
    %c0_116 = arith.constant 0 : index
    %104 = vector.load %arg14[%c5_115, %c0_116] : memref<8x32xf32, #tpu.memory_space<vmem>>, vector<1x8xf32>
    tpu.vector_store %arg14[%c5_115, %c0_116], %103 {strides = array<i32>} : memref<8x32xf32, #tpu.memory_space<vmem>>, vector<1x8xf32>,
    %c5_117 = arith.constant 5 : index
    %c1_118 = arith.constant 1 : index
    %105 = memref.load %arg0[%c5_117, %c1_118] : memref<8x4xi32, #tpu.memory_space<smem>>
    %106 = arith.index_cast %105 : i32 to index
    %c0_119 = arith.constant 0 : index
    %c0_120 = arith.constant 0 : index
    %107 = vector.load %arg1[%106, %c0_119, %c0_120] : memref<20x1x8xf32, #tpu.memory_space<vmem>>, vector<1x1x8xf32>
    %108 = vector.shape_cast %107 : vector<1x1x8xf32> to vector<1x8xf32>
    %c5_121 = arith.constant 5 : index
    %c8_122 = arith.constant 8 : index
    %109 = vector.load %arg14[%c5_121, %c8_122] : memref<8x32xf32, #tpu.memory_space<vmem>>, vector<1x8xf32>
    tpu.vector_store %arg14[%c5_121, %c8_122], %108 {strides = array<i32>} : memref<8x32xf32, #tpu.memory_space<vmem>>, vector<1x8xf32>,
    %c5_123 = arith.constant 5 : index
    %c2_124 = arith.constant 2 : index
    %110 = memref.load %arg0[%c5_123, %c2_124] : memref<8x4xi32, #tpu.memory_space<smem>>
    %111 = arith.index_cast %110 : i32 to index
    %c0_125 = arith.constant 0 : index
    %c0_126 = arith.constant 0 : index
    %112 = vector.load %arg1[%111, %c0_125, %c0_126] : memref<20x1x8xf32, #tpu.memory_space<vmem>>, vector<1x1x8xf32>
    %113 = vector.shape_cast %112 : vector<1x1x8xf32> to vector<1x8xf32>
    %c5_127 = arith.constant 5 : index
    %c16_128 = arith.constant 16 : index
    %114 = vector.load %arg14[%c5_127, %c16_128] : memref<8x32xf32, #tpu.memory_space<vmem>>, vector<1x8xf32>
    tpu.vector_store %arg14[%c5_127, %c16_128], %113 {strides = array<i32>} : memref<8x32xf32, #tpu.memory_space<vmem>>, vector<1x8xf32>,
    %c5_129 = arith.constant 5 : index
    %c3_130 = arith.constant 3 : index
    %115 = memref.load %arg0[%c5_129, %c3_130] : memref<8x4xi32, #tpu.memory_space<smem>>
    %116 = arith.index_cast %115 : i32 to index
    %c0_131 = arith.constant 0 : index
    %c0_132 = arith.constant 0 : index
    %117 = vector.load %arg1[%116, %c0_131, %c0_132] : memref<20x1x8xf32, #tpu.memory_space<vmem>>, vector<1x1x8xf32>
    %118 = vector.shape_cast %117 : vector<1x1x8xf32> to vector<1x8xf32>
    %c5_133 = arith.constant 5 : index
    %c24_134 = arith.constant 24 : index
    %119 = vector.load %arg14[%c5_133, %c24_134] : memref<8x32xf32, #tpu.memory_space<vmem>>, vector<1x8xf32>
    tpu.vector_store %arg14[%c5_133, %c24_134], %118 {strides = array<i32>} : memref<8x32xf32, #tpu.memory_space<vmem>>, vector<1x8xf32>,
    %c6 = arith.constant 6 : index
    %c0_135 = arith.constant 0 : index
    %120 = memref.load %arg0[%c6, %c0_135] : memref<8x4xi32, #tpu.memory_space<smem>>
    %121 = arith.index_cast %120 : i32 to index
    %c0_136 = arith.constant 0 : index
    %c0_137 = arith.constant 0 : index
    %122 = vector.load %arg1[%121, %c0_136, %c0_137] : memref<20x1x8xf32, #tpu.memory_space<vmem>>, vector<1x1x8xf32>
    %123 = vector.shape_cast %122 : vector<1x1x8xf32> to vector<1x8xf32>
    %c6_138 = arith.constant 6 : index
    %c0_139 = arith.constant 0 : index
    %124 = vector.load %arg14[%c6_138, %c0_139] : memref<8x32xf32, #tpu.memory_space<vmem>>, vector<1x8xf32>
    tpu.vector_store %arg14[%c6_138, %c0_139], %123 {strides = array<i32>} : memref<8x32xf32, #tpu.memory_space<vmem>>, vector<1x8xf32>,
    %c6_140 = arith.constant 6 : index
    %c1_141 = arith.constant 1 : index
    %125 = memref.load %arg0[%c6_140, %c1_141] : memref<8x4xi32, #tpu.memory_space<smem>>
    %126 = arith.index_cast %125 : i32 to index
    %c0_142 = arith.constant 0 : index
    %c0_143 = arith.constant 0 : index
    %127 = vector.load %arg1[%126, %c0_142, %c0_143] : memref<20x1x8xf32, #tpu.memory_space<vmem>>, vector<1x1x8xf32>
    %128 = vector.shape_cast %127 : vector<1x1x8xf32> to vector<1x8xf32>
    %c6_144 = arith.constant 6 : index
    %c8_145 = arith.constant 8 : index
    %129 = vector.load %arg14[%c6_144, %c8_145] : memref<8x32xf32, #tpu.memory_space<vmem>>, vector<1x8xf32>
    tpu.vector_store %arg14[%c6_144, %c8_145], %128 {strides = array<i32>} : memref<8x32xf32, #tpu.memory_space<vmem>>, vector<1x8xf32>,
    %c6_146 = arith.constant 6 : index
    %c2_147 = arith.constant 2 : index
    %130 = memref.load %arg0[%c6_146, %c2_147] : memref<8x4xi32, #tpu.memory_space<smem>>
    %131 = arith.index_cast %130 : i32 to index
    %c0_148 = arith.constant 0 : index
    %c0_149 = arith.constant 0 : index
    %132 = vector.load %arg1[%131, %c0_148, %c0_149] : memref<20x1x8xf32, #tpu.memory_space<vmem>>, vector<1x1x8xf32>
    %133 = vector.shape_cast %132 : vector<1x1x8xf32> to vector<1x8xf32>
    %c6_150 = arith.constant 6 : index
    %c16_151 = arith.constant 16 : index
    %134 = vector.load %arg14[%c6_150, %c16_151] : memref<8x32xf32, #tpu.memory_space<vmem>>, vector<1x8xf32>
    tpu.vector_store %arg14[%c6_150, %c16_151], %133 {strides = array<i32>} : memref<8x32xf32, #tpu.memory_space<vmem>>, vector<1x8xf32>,
    %c6_152 = arith.constant 6 : index
    %c3_153 = arith.constant 3 : index
    %135 = memref.load %arg0[%c6_152, %c3_153] : memref<8x4xi32, #tpu.memory_space<smem>>
    %136 = arith.index_cast %135 : i32 to index
    %c0_154 = arith.constant 0 : index
    %c0_155 = arith.constant 0 : index
    %137 = vector.load %arg1[%136, %c0_154, %c0_155] : memref<20x1x8xf32, #tpu.memory_space<vmem>>, vector<1x1x8xf32>
    %138 = vector.shape_cast %137 : vector<1x1x8xf32> to vector<1x8xf32>
    %c6_156 = arith.constant 6 : index
    %c24_157 = arith.constant 24 : index
    %139 = vector.load %arg14[%c6_156, %c24_157] : memref<8x32xf32, #tpu.memory_space<vmem>>, vector<1x8xf32>
    tpu.vector_store %arg14[%c6_156, %c24_157], %138 {strides = array<i32>} : memref<8x32xf32, #tpu.memory_space<vmem>>, vector<1x8xf32>,
    %c7 = arith.constant 7 : index
    %c0_158 = arith.constant 0 : index
    %140 = memref.load %arg0[%c7, %c0_158] : memref<8x4xi32, #tpu.memory_space<smem>>
    %141 = arith.index_cast %140 : i32 to index
    %c0_159 = arith.constant 0 : index
    %c0_160 = arith.constant 0 : index
    %142 = vector.load %arg1[%141, %c0_159, %c0_160] : memref<20x1x8xf32, #tpu.memory_space<vmem>>, vector<1x1x8xf32>
    %143 = vector.shape_cast %142 : vector<1x1x8xf32> to vector<1x8xf32>
    %c7_161 = arith.constant 7 : index
    %c0_162 = arith.constant 0 : index
    %144 = vector.load %arg14[%c7_161, %c0_162] : memref<8x32xf32, #tpu.memory_space<vmem>>, vector<1x8xf32>
    tpu.vector_store %arg14[%c7_161, %c0_162], %143 {strides = array<i32>} : memref<8x32xf32, #tpu.memory_space<vmem>>, vector<1x8xf32>,
    %c7_163 = arith.constant 7 : index
    %c1_164 = arith.constant 1 : index
    %145 = memref.load %arg0[%c7_163, %c1_164] : memref<8x4xi32, #tpu.memory_space<smem>>
    %146 = arith.index_cast %145 : i32 to index
    %c0_165 = arith.constant 0 : index
    %c0_166 = arith.constant 0 : index
    %147 = vector.load %arg1[%146, %c0_165, %c0_166] : memref<20x1x8xf32, #tpu.memory_space<vmem>>, vector<1x1x8xf32>
    %148 = vector.shape_cast %147 : vector<1x1x8xf32> to vector<1x8xf32>
    %c7_167 = arith.constant 7 : index
    %c8_168 = arith.constant 8 : index
    %149 = vector.load %arg14[%c7_167, %c8_168] : memref<8x32xf32, #tpu.memory_space<vmem>>, vector<1x8xf32>
    tpu.vector_store %arg14[%c7_167, %c8_168], %148 {strides = array<i32>} : memref<8x32xf32, #tpu.memory_space<vmem>>, vector<1x8xf32>,
    %c7_169 = arith.constant 7 : index
    %c2_170 = arith.constant 2 : index
    %150 = memref.load %arg0[%c7_169, %c2_170] : memref<8x4xi32, #tpu.memory_space<smem>>
    %151 = arith.index_cast %150 : i32 to index
    %c0_171 = arith.constant 0 : index
    %c0_172 = arith.constant 0 : index
    %152 = vector.load %arg1[%151, %c0_171, %c0_172] : memref<20x1x8xf32, #tpu.memory_space<vmem>>, vector<1x1x8xf32>
    %153 = vector.shape_cast %152 : vector<1x1x8xf32> to vector<1x8xf32>
    %c7_173 = arith.constant 7 : index
    %c16_174 = arith.constant 16 : index
    %154 = vector.load %arg14[%c7_173, %c16_174] : memref<8x32xf32, #tpu.memory_space<vmem>>, vector<1x8xf32>
    tpu.vector_store %arg14[%c7_173, %c16_174], %153 {strides = array<i32>} : memref<8x32xf32, #tpu.memory_space<vmem>>, vector<1x8xf32>,
    %c7_175 = arith.constant 7 : index
    %c3_176 = arith.constant 3 : index
    %155 = memref.load %arg0[%c7_175, %c3_176] : memref<8x4xi32, #tpu.memory_space<smem>>
    %156 = arith.index_cast %155 : i32 to index
    %c0_177 = arith.constant 0 : index
    %c0_178 = arith.constant 0 : index
    %157 = vector.load %arg1[%156, %c0_177, %c0_178] : memref<20x1x8xf32, #tpu.memory_space<vmem>>, vector<1x1x8xf32>
    %158 = vector.shape_cast %157 : vector<1x1x8xf32> to vector<1x8xf32>
    %c7_179 = arith.constant 7 : index
    %c24_180 = arith.constant 24 : index
    %159 = vector.load %arg14[%c7_179, %c24_180] : memref<8x32xf32, #tpu.memory_space<vmem>>, vector<1x8xf32>
    tpu.vector_store %arg14[%c7_179, %c24_180], %158 {strides = array<i32>} : memref<8x32xf32, #tpu.memory_space<vmem>>, vector<1x8xf32>,
    %c0_181 = arith.constant 0 : index
    %c0_182 = arith.constant 0 : index
    %160 = vector.load %arg14[%c0_181, %c0_182] : memref<8x32xf32, #tpu.memory_space<vmem>>, vector<8x32xf32>
    %c0_183 = arith.constant 0 : index
    %c0_184 = arith.constant 0 : index
    %161 = vector.load %arg3[%c0_183, %c0_184] : memref<32x96xf32, #tpu.memory_space<vmem>>, vector<32x96xf32>
    %cst = arith.constant dense<0.000000e+00> : vector<8x96xf32>
    %162 = tpu.matmul %160, %161, %cst {dimension_numbers = #tpu.dot_dimension_numbers<[1], [0], [0], [1], [0, 0, 1, 1], [], []>, precision = #tpu.contract_precision<fp32>} : vector<8x32xf32>, vector<32x96xf32>, vector<8x96xf32> -> vector<8x96xf32>
    %c0_185 = arith.constant 0 : index
    %c0_186 = arith.constant 0 : index
    %163 = vector.load %arg4[%c0_185, %c0_186] : memref<1x96xf32, #tpu.memory_space<vmem>>, vector<1x96xf32>
    %164 = vector.broadcast %163 : vector<1x96xf32> to vector<8x96xf32>
    %165 = arith.addf %162, %164 : vector<8x96xf32>
    %cst_187 = arith.constant dense<0.000000e+00> : vector<96xf32>
    %166 = vector.multi_reduction <add>, %165, %cst_187 [0] : vector<8x96xf32> to vector<96xf32>
    %167 = vector.shape_cast %166 : vector<96xf32> to vector<1x96xf32>
    %168 = arith.mulf %165, %165 : vector<8x96xf32>
    %cst_188 = arith.constant dense<0.000000e+00> : vector<96xf32>
    %169 = vector.multi_reduction <add>, %168, %cst_188 [0] : vector<8x96xf32> to vector<96xf32>
    %170 = vector.shape_cast %169 : vector<96xf32> to vector<1x96xf32>
    %cst_189 = arith.constant 1.250000e-01 : f32
    %171 = vector.broadcast %cst_189 : f32 to vector<1x96xf32>
    %172 = arith.mulf %167, %171 : vector<1x96xf32>
    %cst_190 = arith.constant 1.250000e-01 : f32
    %173 = vector.broadcast %cst_190 : f32 to vector<1x96xf32>
    %174 = arith.mulf %170, %173 : vector<1x96xf32>
    %175 = arith.mulf %172, %172 : vector<1x96xf32>
    %176 = arith.subf %174, %175 : vector<1x96xf32>
    %cst_191 = arith.constant 0.000000e+00 : f32
    %177 = vector.broadcast %cst_191 : f32 to vector<1x96xf32>
    %178 = arith.maximumf %176, %177 : vector<1x96xf32>
    %c0_192 = arith.constant 0 : index
    %c0_193 = arith.constant 0 : index
    %179 = vector.load %arg5[%c0_192, %c0_193] : memref<1x96xf32, #tpu.memory_space<vmem>>, vector<1x96xf32>
    %cst_194 = arith.constant 9.99999974E-6 : f32
    %180 = vector.broadcast %cst_194 : f32 to vector<1x96xf32>
    %181 = arith.addf %178, %180 : vector<1x96xf32>
    %182 = math.rsqrt %181 : vector<1x96xf32>
    %183 = arith.mulf %179, %182 : vector<1x96xf32>
    %c0_195 = arith.constant 0 : index
    %c0_196 = arith.constant 0 : index
    %184 = vector.load %arg6[%c0_195, %c0_196] : memref<1x96xf32, #tpu.memory_space<vmem>>, vector<1x96xf32>
    %185 = arith.mulf %172, %183 : vector<1x96xf32>
    %186 = arith.subf %184, %185 : vector<1x96xf32>
    %187 = vector.broadcast %183 : vector<1x96xf32> to vector<8x96xf32>
    %188 = arith.mulf %165, %187 : vector<8x96xf32>
    %189 = vector.broadcast %186 : vector<1x96xf32> to vector<8x96xf32>
    %190 = arith.addf %188, %189 : vector<8x96xf32>
    %cst_197 = arith.constant 0.000000e+00 : f32
    %191 = vector.broadcast %cst_197 : f32 to vector<8x96xf32>
    %192 = arith.maximumf %190, %191 : vector<8x96xf32>
    %c0_198 = arith.constant 0 : index
    %c0_199 = arith.constant 0 : index
    %c0_200 = arith.constant 0 : index
    %193 = vector.load %arg2[%c0_198, %c0_199, %c0_200] : memref<2x8x96xf32, #tpu.memory_space<vmem>>, vector<1x8x96xf32>
    %194 = vector.shape_cast %193 : vector<1x8x96xf32> to vector<8x96xf32>
    %195 = arith.mulf %192, %194 : vector<8x96xf32>
    %c0_201 = arith.constant 0 : index
    %c0_202 = arith.constant 0 : index
    %196 = vector.load %arg7[%c0_201, %c0_202] : memref<96x96xf32, #tpu.memory_space<vmem>>, vector<96x96xf32>
    %cst_203 = arith.constant dense<0.000000e+00> : vector<8x96xf32>
    %197 = tpu.matmul %195, %196, %cst_203 {dimension_numbers = #tpu.dot_dimension_numbers<[1], [0], [0], [1], [0, 0, 1, 1], [], []>, precision = #tpu.contract_precision<fp32>} : vector<8x96xf32>, vector<96x96xf32>, vector<8x96xf32> -> vector<8x96xf32>
    %c0_204 = arith.constant 0 : index
    %c0_205 = arith.constant 0 : index
    %198 = vector.load %arg8[%c0_204, %c0_205] : memref<1x96xf32, #tpu.memory_space<vmem>>, vector<1x96xf32>
    %199 = vector.broadcast %198 : vector<1x96xf32> to vector<8x96xf32>
    %200 = arith.addf %197, %199 : vector<8x96xf32>
    %cst_206 = arith.constant dense<0.000000e+00> : vector<96xf32>
    %201 = vector.multi_reduction <add>, %200, %cst_206 [0] : vector<8x96xf32> to vector<96xf32>
    %202 = vector.shape_cast %201 : vector<96xf32> to vector<1x96xf32>
    %203 = arith.mulf %200, %200 : vector<8x96xf32>
    %cst_207 = arith.constant dense<0.000000e+00> : vector<96xf32>
    %204 = vector.multi_reduction <add>, %203, %cst_207 [0] : vector<8x96xf32> to vector<96xf32>
    %205 = vector.shape_cast %204 : vector<96xf32> to vector<1x96xf32>
    %cst_208 = arith.constant 1.250000e-01 : f32
    %206 = vector.broadcast %cst_208 : f32 to vector<1x96xf32>
    %207 = arith.mulf %202, %206 : vector<1x96xf32>
    %cst_209 = arith.constant 1.250000e-01 : f32
    %208 = vector.broadcast %cst_209 : f32 to vector<1x96xf32>
    %209 = arith.mulf %205, %208 : vector<1x96xf32>
    %210 = arith.mulf %207, %207 : vector<1x96xf32>
    %211 = arith.subf %209, %210 : vector<1x96xf32>
    %cst_210 = arith.constant 0.000000e+00 : f32
    %212 = vector.broadcast %cst_210 : f32 to vector<1x96xf32>
    %213 = arith.maximumf %211, %212 : vector<1x96xf32>
    %c0_211 = arith.constant 0 : index
    %c0_212 = arith.constant 0 : index
    %214 = vector.load %arg9[%c0_211, %c0_212] : memref<1x96xf32, #tpu.memory_space<vmem>>, vector<1x96xf32>
    %cst_213 = arith.constant 9.99999974E-6 : f32
    %215 = vector.broadcast %cst_213 : f32 to vector<1x96xf32>
    %216 = arith.addf %213, %215 : vector<1x96xf32>
    %217 = math.rsqrt %216 : vector<1x96xf32>
    %218 = arith.mulf %214, %217 : vector<1x96xf32>
    %c0_214 = arith.constant 0 : index
    %c0_215 = arith.constant 0 : index
    %219 = vector.load %arg10[%c0_214, %c0_215] : memref<1x96xf32, #tpu.memory_space<vmem>>, vector<1x96xf32>
    %220 = arith.mulf %207, %218 : vector<1x96xf32>
    %221 = arith.subf %219, %220 : vector<1x96xf32>
    %222 = vector.broadcast %218 : vector<1x96xf32> to vector<8x96xf32>
    %223 = arith.mulf %200, %222 : vector<8x96xf32>
    %224 = vector.broadcast %221 : vector<1x96xf32> to vector<8x96xf32>
    %225 = arith.addf %223, %224 : vector<8x96xf32>
    %cst_216 = arith.constant 0.000000e+00 : f32
    %226 = vector.broadcast %cst_216 : f32 to vector<8x96xf32>
    %227 = arith.maximumf %225, %226 : vector<8x96xf32>
    %c1_217 = arith.constant 1 : index
    %c0_218 = arith.constant 0 : index
    %c0_219 = arith.constant 0 : index
    %228 = vector.load %arg2[%c1_217, %c0_218, %c0_219] : memref<2x8x96xf32, #tpu.memory_space<vmem>>, vector<1x8x96xf32>
    %229 = vector.shape_cast %228 : vector<1x8x96xf32> to vector<8x96xf32>
    %230 = arith.mulf %227, %229 : vector<8x96xf32>
    %c0_220 = arith.constant 0 : index
    %c0_221 = arith.constant 0 : index
    %231 = vector.load %arg11[%c0_220, %c0_221] : memref<96x1xf32, #tpu.memory_space<vmem>>, vector<96x1xf32>
    %cst_222 = arith.constant dense<0.000000e+00> : vector<8x1xf32>
    %232 = tpu.matmul %230, %231, %cst_222 {dimension_numbers = #tpu.dot_dimension_numbers<[1], [0], [0], [1], [0, 0, 1, 1], [], []>, precision = #tpu.contract_precision<fp32>} : vector<8x96xf32>, vector<96x1xf32>, vector<8x1xf32> -> vector<8x1xf32>
    %c0_223 = arith.constant 0 : index
    %c0_224 = arith.constant 0 : index
    %233 = vector.load %arg12[%c0_223, %c0_224] : memref<1x1xf32, #tpu.memory_space<vmem>>, vector<1x1xf32>
    %234 = vector.broadcast %233 : vector<1x1xf32> to vector<8x1xf32>
    %235 = arith.addf %232, %234 : vector<8x1xf32>
    %c0_225 = arith.constant 0 : index
    %c0_226 = arith.constant 0 : index
    %236 = vector.load %arg13[%c0_225, %c0_226] : memref<8x1xf32, #tpu.memory_space<vmem>>, vector<8x1xf32>
    tpu.vector_store %arg13[%c0_225, %c0_226], %235 {strides = array<i32>} : memref<8x1xf32, #tpu.memory_space<vmem>>, vector<8x1xf32>,
    return
  }
}

</mosaic_0001>

<bundles_post_ra>
// kernel: _lambda_.1
= control target key start
LH: loop header
LB: loop body
LE: loop exit
PB: predicated region body
PF: predicated region fallthrough
CT: control target
= control target key end

     0   :  { %s2126_s0 = inlined_call_operand.vmem [shape: s32[8,4], index: 0, kind: input, shape index: {}]   ;;  %s2127_s1 = inlined_call_operand.vmem [shape: f32[20,1,8], index: 1, kind: input, shape index: {}]   ;;  %s2128_s2 = inlined_call_operand.vmem [shape: f32[2,8,96], index: 2, kind: input, shape index: {}]   ;;  %s2129_s3 = inlined_call_operand.vmem [shape: f32[32,96], index: 3, kind: input, shape index: {}]   ;;  %s2130_s4 = inlined_call_operand.vmem [shape: f32[1,96], index: 4, kind: input, shape index: {}]   ;;  %s2131_s5 = inlined_call_operand.vmem [shape: f32[1,96], index: 5, kind: input, shape index: {}]   ;;  %s2132_s6 = inlined_call_operand.vmem [shape: f32[1,96], index: 6, kind: input, shape index: {}]   ;;  %s2133_s7 = inlined_call_operand.vmem [shape: f32[96,96], index: 7, kind: input, shape index: {}]   ;;  %s2134_s8 = inlined_call_operand.vmem [shape: f32[1,96], index: 8, kind: input, shape index: {}]   ;;  %s2135_s9 = inlined_call_operand.vmem [shape: f32[1,96], index: 9, kind: input, shape index: {}]   ;;  %s2136_s10 = inlined_call_operand.vmem [shape: f32[1,96], index: 10, kind: input, shape index: {}]   ;;  %s2137_s11 = inlined_call_operand.vmem [shape: f32[96,1], index: 11, kind: input, shape index: {}]   ;;  %s2138_s12 = inlined_call_operand.<no memory space> [shape: f32[1,1], index: 12, kind: input, shape index: {}]   ;;  %s2139_s13 = inlined_call_operand.vmem [shape: f32[8,1], index: 13, kind: output, shape index: {}]  }
   0x1   :  { %2146 = sst [smem:[#allocation7_spill]] %s2128_s2  ;;  %v18_v0 = vstv %s2138_s12 }
   0x2   :  { %2147 = sst [smem:[#allocation8_spill]] %s2129_s3  ;;  %19 = vst [vmem:[#allocation3] sm:$0x1] %v18_v0 }
   0x3   :  { %2148 = sst [smem:[#allocation9_spill]] %s2130_s4 }
   0x4   :  { %2149 = sst [smem:[#allocation10_spill]] %s2131_s5 }
   0x5   :  { %2150 = sst [smem:[#allocation11_spill]] %s2132_s6 }
   0x6   :  { %2151 = sst [smem:[#allocation12_spill]] %s2133_s7 }
   0x7   :  { %2152 = sst [smem:[#allocation13_spill]] %s2134_s8 }
   0x8   :  { %2153 = sst [smem:[#allocation14_spill]] %s2135_s9 }
   0x9   :  { %2154 = sst [smem:[#allocation15_spill]] %s2136_s10 }
   0xa   :  { %2155 = sst [smem:[#allocation16_spill]] %s2137_s11 }
   0xb   :  { %2156 = sst [smem:[#allocation17_spill]] %s2139_s13 }
   0xc   :  { %20 = vsyncpa [#allocation5], 0  ;;  %s26_s29 = sshll.u32 %s2126_s0, 4  ;;  %s1341_s30 = smov [#allocation4]   ;;  %s27_s29 = int_to_ptr.vmem [resolvable:$true] %s26_s29 }
   0xd   :  { %29 = dma.vmem_to_smem %s27_s29, 128, %s1341_s30, [#allocation5]  }
   0xe   :  { %1339 = dma.done.wait [#allocation5], 128  }
   0xf   :  { %1340 = vsyncadd [#allocation5], 4294967168 }
  0x10   :  { %58 = sfence }
  0x11   :  { %s1268_s14 = sld [smem:[#allocation4 + $0x101]]  ;;  %s2140_s30 = smov 8   ;;  %vm62_vm0 = vcmask 57344   ;;  %vm72_vm1 = vcmask 122944   ;;  %vm82_vm2 = vcmask 188544   ;;  %vm92_vm3 = vcmask 254144  }
  0x12   :  { %s1260_s15 = sld [smem:[#allocation4 + $0x1]]  ;;  %vm320_vm4 = vcmask 261120   ;;  %vm509_vm5 = vcmask 785408   ;;  %vm1221_vm12 = vcmask 7168  }
  0x13   :  { %s1272_s16 = sld [smem:[#allocation4 + $0x181]] }
  0x14   :  { %s1264_s17 = sld [smem:[#allocation4 + $0x81]] }
  0x15   :  { %s1421_s18 = sld [smem:[#allocation4 + $0x381]] }
  0x16   :  { %s1423_s12 = sld [smem:[#allocation4 + $0x301]] }
  0x17   :  { %s130_s0 = scalar_lea.vmem %s2127_s1, %s1268_s14  ;;  %s1276_s21 = sld [smem:[#allocation4 + $0x201]] }
  0x18   :  { %v1296_v1 = vld [vmem:[%s130_s0] ss:$0 sm:$0xff]  ;;  %s65_s24 = scalar_lea.vmem %s2127_s1, %s1260_s15  ;;  %s1431_s25 = sld [smem:[#allocation4 + $0x102]] }
  0x19   :  { %v1297_v2 = vld [vmem:[%s65_s24] ss:$0 sm:$0xff]  ;;  %s161_s28 = scalar_lea.vmem %s2127_s1, %s1272_s16  ;;  %s1436_s29 = sld [smem:[#allocation4 + $0x82]]  ;;  %134 = vrot.lane.b32.xlu1 %v1296_v1, %s2140_s30 }
  0x1a   :  { %s99_s20 = scalar_lea.vmem %s2127_s1, %s1264_s17  ;;  %s1280_s0 = sld [smem:[#allocation4 + $0x281]]  ;;  %69 = vrot.lane.b32.xlu0 %v1297_v2, %s2140_s30  ;;  %v1298_v3 = vld [vmem:[%s161_s28] ss:$0 sm:$0xff] }
  0x1b   :  { %s285_s23 = scalar_lea.vmem %s2127_s1, %s1421_s18  ;;  %s1447_s24 = sld [smem:[#allocation4 + $0x282]]  ;;  %v1299_v5 = vld [vmem:[%s99_s20] ss:$0 sm:$0xff] }
  0x1c   :  { %s1453_s13 = sld [smem:[#allocation4 + $0x202]]  ;;  %s2157_s14 = smov 8   ;;  %v1300_v7 = vld [vmem:[%s285_s23] ss:$0 sm:$0xff] }
  0x1d   :  { %s192_s19 = scalar_lea.vmem %s2127_s1, %s1276_s21  ;;  %s1458_s30 = sld [smem:[#allocation4 + $0x2]] }
  0x1e   :  { %v1302_v4 = vld [vmem:[%s192_s19] ss:$0 sm:$0xff]  ;;  %s1464_s10 = sld [smem:[#allocation4 + $0x3]]  ;;  %s2158_s11 = scalar_lea.vmem %s2127_s1, %s1423_s12 }
  0x1f   :  { %s1470_s27 = sld [smem:[#allocation4 + $0x382]]  ;;  %196 = vrot.lane.b32.xlu2 %v1302_v4, %s2157_s14  ;;  %v1301_v8 = vld [vmem:[%s2158_s11] ss:$0 sm:$0xff]  ;;  %s2159_s16 = scalar_lea.vmem %s2127_s1, %s1431_s25 }
  0x20   :  { %s223_s19 = scalar_lea.vmem %s2127_s1, %s1280_s0  ;;  %s1476_s9 = sld [smem:[#allocation4 + $0x182]]  ;;  %v1303_v10 = vld [vmem:[%s2159_s16] ss:$0 sm:$0xff] }
  0x21   :  { %s1482_s22 = sld [smem:[#allocation4 + $0x183]]  ;;  %165 = vrot.lane.b32.xlu1 %v1298_v3, %s2157_s14  ;;  %v1305_v6 = vld [vmem:[%s223_s19] ss:$0 sm:$0xff]  ;;  %s2160_s4 = scalar_lea.vmem %s2127_s1, %s1436_s29 }
  0x22   :  { %s1489_s8 = sld [smem:[#allocation4 + $0x103]]  ;;  %103 = vrot.lane.b32.xlu0 %v1299_v5, %s2157_s14  ;;  %v1304_v11 = vld [vmem:[%s2160_s4] ss:$0 sm:$0xff]  ;;  %s2161_s25 = scalar_lea.vmem %s2127_s1, %s1447_s24 }
  0x23   :  { %s75_s17 = scalar_lea.vmem %s2127_s1, %s1458_s30  ;;  %s1496_s18 = sld [smem:[#allocation4 + $0x302]]  ;;  %v1306_v13 = vld [vmem:[%s2161_s25] ss:$0 sm:$0xff] }
  0x24   :  { %s1502_s2 = sld [smem:[#allocation4 + $0x303]]  ;;  %v1308_v9 = vld [vmem:[%s75_s17] ss:$0 sm:$0xff]  ;;  %s2163_s15 = scalar_lea.vmem %s2127_s1, %s1464_s10 }
  0x25   :  { %s1508_s6 = sld [smem:[#allocation4 + $0x283]]  ;;  %v1309_v16 = vld [vmem:[%s2163_s15] ss:$0 sm:$0xff]  ;;  %s2164_s24 = scalar_lea.vmem %s2127_s1, %s1470_s27 }
  0x26   :  { %s170_s21 = scalar_lea.vmem %s2127_s1, %s1476_s9  ;;  %s1514_s19 = sld [smem:[#allocation4 + $0x83]]  ;;  %v1310_v17 = vld [vmem:[%s2164_s24] ss:$0 sm:$0xff] }
  0x27   :  { %s1525_s5 = sld [smem:[#allocation4 + $0x203]]  ;;  %227 = vrot.lane.b32.xlu2 %v1305_v6, %s2157_s14  ;;  %v1311_v12 = vld [vmem:[%s170_s21] ss:$0 sm:$0xff] }
  0x28   :  { %s1532_s0 = sld [smem:[#allocation4 + $0x383]]  ;;  %s2166_s4 = scalar_lea.vmem %s2127_s1, %s1489_s8 }
  0x29   :  { %s263_s11 = scalar_lea.vmem %s2127_s1, %s1496_s18  ;;  %289 = vrot.lane.b32.xlu1 %v1300_v7, %s2157_s14  ;;  %s2162_s18 = scalar_lea.vmem %s2127_s1, %s1453_s13  ;;  %v1313_v20 = vld [vmem:[%s2166_s4] ss:$0 sm:$0xff] }
  0x2a   :  { %258 = vrot.lane.b32.xlu0 %v1301_v8, %s2157_s14  ;;  %v1307_v14 = vld [vmem:[%s2162_s18] ss:$0 sm:$0xff]  ;;  %s1344_s14 = smov 24   ;;  %s1275_s27 = sld [smem:[#allocation4 + $0x200]] }
  0x2b   :  { %s241_s23 = scalar_lea.vmem %s2127_s1, %s1508_s6  ;;  %v1314_v15 = vld [vmem:[%s263_s11] ss:$0 sm:$0xff]  ;;  %s2165_s11 = scalar_lea.vmem %s2127_s1, %s1482_s22 }
  0x2c   :  { %s117_s20 = scalar_lea.vmem %s2127_s1, %s1514_s19  ;;  %s1343_s19 = smov 16   ;;  %v1312_v19 = vld [vmem:[%s2165_s11] ss:$0 sm:$0xff] }
  0x2d   :  { %s210_s7 = scalar_lea.vmem %s2127_s1, %s1525_s5  ;;  %v1317_v18 = vld [vmem:[%s117_s20] ss:$0 sm:$0xff]  ;;  %s1267_s22 = sld [smem:[#allocation4 + $0x100]] }
  0x2e   :  { %s303_s28 = scalar_lea.vmem %s2127_s1, %s1532_s0  ;;  %v1318_v21 = vld [vmem:[%s210_s7] ss:$0 sm:$0xff]  ;;  %s1279_s12 = sld [smem:[#allocation4 + $0x280]] }
  0x2f   :  { %79 = vrot.lane.b32.xlu2 %v1308_v9, %s1343_s19  ;;  %v1316_v23 = vld [vmem:[%s241_s23] ss:$0 sm:$0xff]  ;;  %s59_s23 = sld [smem:[#allocation4]] }
  0x30   :  { %v1319_v24 = vld [vmem:[%s303_s28] ss:$0 sm:$0xff]  ;;  %s188_s18 = scalar_lea.vmem %s2127_s1, %s1275_s27  ;;  %s1271_s0 = sld [smem:[#allocation4 + $0x180]] }
  0x31   :  { %143 = vrot.lane.b32.xlu1 %v1303_v10, %s1343_s19  ;;  %v189_v25 = vld [vmem:[%s188_s18] sm:$0x1]  ;;  %s1263_s16 = sld [smem:[#allocation4 + $0x80]] }
  0x32   :  { %112 = vrot.lane.b32.xlu0 %v1304_v11, %s1343_s19  ;;  %190 = vst.msk [vmem:[#allocation2 + $0x4] sm:$0x1] %vm62_vm0, %v189_v25  ;;  %s1287_s24 = sld [smem:[#allocation4 + $0x380]] }
  0x33   :  { %s126_s6 = scalar_lea.vmem %s2127_s1, %s1267_s22  ;;  %s1283_s5 = sld [smem:[#allocation4 + $0x300]] }
  0x34   :  { %v127_v26 = vld [vmem:[%s126_s6] sm:$0x1]  ;;  %s219_s17 = scalar_lea.vmem %s2127_s1, %s1279_s12  ;;  %s2168_s26 = sld [smem:[#allocation8_spill]] }
  0x35   :  { %128 = vst.msk [vmem:[#allocation2 + $0x2] sm:$0x1] %vm62_vm0, %v127_v26  ;;  %s60_s21 = scalar_lea.vmem %s2127_s1, %s59_s23  ;;  %v220_v28 = vld [vmem:[%s219_s17] sm:$0x1]  ;;  %s2169_s15 = sld [smem:[#allocation12_spill]] }
  0x36   :  { %s157_s10 = scalar_lea.vmem %s2127_s1, %s1271_s0  ;;  %v61_v27 = vld [vmem:[%s60_s21] sm:$0x1]  ;;  %221 = vst.msk [vmem:[#allocation2 + $0x5] sm:$0x1] %vm62_vm0, %v220_v28  ;;  %s2170_s11 = sld [smem:[#allocation9_spill]] }
  0x37   :  { %174 = vrot.lane.b32.xlu2 %v1311_v12, %s1343_s19  ;;  %63 = vst.msk [vmem:[#allocation2] sm:$0x1] %vm62_vm0, %v61_v27  ;;  %v158_v29 = vld [vmem:[%s157_s10] sm:$0x1]  ;;  %s95_s3 = scalar_lea.vmem %s2127_s1, %s1263_s16  ;;  %s2171_s12 = sld [smem:[#allocation10_spill]] }
  0x38   :  { %159 = vst.msk [vmem:[#allocation2 + $0x3] sm:$0x1] %vm62_vm0, %v158_v29  ;;  %s281_s25 = scalar_lea.vmem %s2127_s1, %s1287_s24  ;;  %v96_v30 = vld [vmem:[%s95_s3] sm:$0x1]  ;;  %s2173_s24 = sld [smem:[#allocation7_spill]] }
  0x39   :  { %236 = vrot.lane.b32.xlu1 %v1306_v13, %s1343_s19  ;;  %97 = vst.msk [vmem:[#allocation2 + $0x1] sm:$0x1] %vm62_vm0, %v96_v30  ;;  %v282_v31 = vld [vmem:[%s281_s25] sm:$0x1]  ;;  %s250_s30 = scalar_lea.vmem %s2127_s1, %s1283_s5  ;;  %s2174_s17 = sld [smem:[#allocation16_spill]] }
  0x3a   :  { %205 = vrot.lane.b32.xlu0 %v1307_v14, %s1343_s19  ;;  %283 = vst.msk [vmem:[#allocation2 + $0x7] sm:$0x1] %vm62_vm0, %v282_v31  ;;  %v251_v33 = vld [vmem:[%s250_s30] sm:$0x1]  ;;  %v315_v44 = vld [vmem:[%s2168_s26 + $0x18] sm:$0xff]  ;;  %v314_v46 = vld [vmem:[%s2168_s26 + $0x10] sm:$0xff] }
  0x3b   :  { %252 = vst.msk [vmem:[#allocation2 + $0x6] sm:$0x1] %vm62_vm0, %v251_v33  ;;  %v336_v45 = vand.u32 4294901760, %v315_v44  ;;  %v338_v49 = vand.u32 4294901760, %v314_v46  ;;  %v313_v50 = vld [vmem:[%s2168_s26 + $0x8] sm:$0xff]  ;;  %v312_v56 = vld [vmem:[%s2168_s26] sm:$0xff] }
  0x3c   :  { %v340_v54 = vand.u32 4294901760, %v313_v50  ;;  %v342_v60 = vand.u32 4294901760, %v312_v56  ;;  %v567_v26 = vld [vmem:[%s2169_s15 + $0x50] sm:$0xff]  ;;  %v566_v29 = vld [vmem:[%s2169_s15 + $0x48] sm:$0xff]  ;;  %v1320_v33 = vld [vmem:[%s2170_s11] ss:$0 sm:$0xff] }
  0x3d   :  { %v366_v48 = vsub.f32 %v315_v44, %v336_v45  ;;  %437 = vmatpush.msra.mxu3 %v336_v45  ;;  %337 = vmatpush.msra.mxu0 %v336_v45  ;;  %v372_v53 = vsub.f32 %v314_v46, %v338_v49  ;;  %v1694_v28 = vand.u32 4294901760, %v567_v26  ;;  %s2175_s5 = sld [smem:[#allocation13_spill]] }
  0x3e   :  { %v378_v59 = vsub.f32 %v313_v50, %v340_v54  ;;  %v384_v0 = vsub.f32 %v312_v56, %v342_v60  ;;  %s2177_s11 = sld [smem:[#allocation15_spill]] }
  0x3f   :  { %267 = vrot.lane.b32.xlu2 %v1314_v15, %s1343_s19  ;;  %v367_v52 = vand.u32 4294901760, %v366_v48  ;;  %408 = vmatpush.msra.mxu2 %v366_v48  ;;  %v373_v58 = vand.u32 4294901760, %v372_v53  ;;  %v1703_v31 = vsub.f32 %v567_v26, %v1694_v28  ;;  %s2178_s27 = sld [smem:[#allocation17_spill]] }
  0x40   :  { %439 = vmatpush.msra.mxu3 %v338_v49  ;;  %339 = vmatpush.msra.mxu0 %v338_v49  ;;  %v379_v63 = vand.u32 4294901760, %v378_v59  ;;  %v385_v4 = vand.u32 4294901760, %v384_v0 }
  0x41   :  { %89 = vrot.lane.b32.xlu1 %v1309_v16, %s1344_s14  ;;  %v368_v57 = vsub.f32 %v366_v48, %v367_v52  ;;  %411 = vmatpush.msra.mxu2 %v372_v53  ;;  %v374_v62 = vsub.f32 %v372_v53, %v373_v58  ;;  %v563_v48 = vld [vmem:[%s2169_s15 + $0x30] sm:$0xff] }
  0x42   :  { %298 = vrot.lane.b32.xlu0 %v1310_v17, %s1343_s19  ;;  %s2167_s19 = scalar_lea.vmem %s2127_s1, %s1502_s2  ;;  %441 = vmatpush.msra.mxu3 %v340_v54  ;;  %v380_v3 = vsub.f32 %v378_v59, %v379_v63  ;;  %v386_v7 = vsub.f32 %v384_v0, %v385_v4 }
  0x43   :  { %v1315_v22 = vld [vmem:[%s2167_s19] ss:$0 sm:$0xff]  ;;  %341 = vmatpush.msra.mxu0 %v340_v54  ;;  %v369_v61 = vand.u32 4294901760, %v368_v57  ;;  %414 = vmatpush.msra.mxu2 %v378_v59  ;;  %v375_v2 = vand.u32 4294901760, %v374_v62 }
  0x44   :  { %443 = vmatpush.msra.mxu3 %v342_v60  ;;  %v381_v6 = vand.u32 4294901760, %v380_v3  ;;  %v387_v9 = vand.u32 4294901760, %v386_v7  ;;  %v560_v7 = vld [vmem:[%s2169_s15 + $0x18] sm:$0xff] }
  0x45   :  { %343 = vmatpush.msra.mxu0 %v342_v60  ;;  %370 = vmatpush.msra.mxu1 %v369_v61 }
  0x46   :  { %417 = vmatpush.msra.mxu2 %v384_v0 }
  0x47   :  { %121 = vrot.lane.b32.xlu2 %v1317_v18, %s1344_s14  ;;  %466 = vmatpush.msrb.mxu0 %v367_v52  ;;  %v1750_v52 = vand.u32 4294901760, %v563_v48 }
  0x48   :  { %376 = vmatpush.msra.mxu1 %v375_v2 }
  0x49   :  { %183 = vrot.lane.b32.xlu1 %v1312_v19, %s1344_s14  ;;  %470 = vmatpush.msrb.mxu0 %v373_v58  ;;  %v1765_v59 = vsub.f32 %v563_v48, %v1750_v52 }
  0x4a   :  { %152 = vrot.lane.b32.xlu0 %v1313_v20, %s1344_s14  ;;  %382 = vmatpush.msra.mxu1 %v381_v6 }
  0x4b   :  { %474 = vmatpush.msrb.mxu0 %v379_v63  ;;  %v561_v63 = vld [vmem:[%s2169_s15 + $0x20] sm:$0xff]  ;;  %v649_v2 = vand.u32 4294901760, %v1765_v59 }
  0x4c   :  { %388 = vmatpush.msra.mxu1 %v387_v9 }
  0x4d   :  { %478 = vmatpush.msrb.mxu0 %v385_v4  ;;  %v1779_v4 = vand.u32 4294901760, %v561_v63  ;;  %v650_v9 = vsub.f32 %v1765_v59, %v649_v2 }
  0x4e   :  { %497 = vmatpush.msrb.mxu1 %v336_v45 }
  0x4f   :  { %214 = vrot.lane.b32.xlu2 %v1318_v21, %s1344_s14 }
  0x50   :  { %499 = vmatpush.msrb.mxu1 %v338_v49 }
  0x51   :  { %276 = vrot.lane.b32.xlu1 %v1315_v22, %s1344_s14 }
  0x52   :  { %245 = vrot.lane.b32.xlu0 %v1316_v23, %s1344_s14  ;;  %501 = vmatpush.msrb.mxu1 %v340_v54 }
  0x54   :  { %503 = vmatpush.msrb.mxu1 %v342_v60 }
  0x57   :  { %307 = vrot.lane.b32.xlu2 %v1319_v24, %s1344_s14  ;;  %v568_v24 = vld [vmem:[%s2169_s15 + $0x58] sm:$0xff]  ;;  %s2176_s14 = sld [smem:[#allocation14_spill]] }
  0x58   :  { %v1686_v25 = vand.u32 4294901760, %v568_v24 }
  0x5a   :  { %v1692_v27 = vsub.f32 %v568_v24, %v1686_v25  ;;  %581 = vmatpush.msrb.mxu2 %v1686_v25 }
  0x5c   :  { %v619_v30 = vand.u32 4294901760, %v1692_v27  ;;  %583 = vmatpush.msrb.mxu2 %v1694_v28 }
  0x79   :  { %v197_v32 = vpop.permute.xlu2 %196 }
  0x7a   :  { %199 = vst.msk [vmem:[#allocation2 + $0x4] sm:$0x1] %vm72_vm1, %v197_v32  ;;  %v1705_v32 = vand.u32 4294901760, %v566_v29 }
  0x7c   :  { %585 = vmatpush.msrb.mxu2 %v1705_v32 }
  0x81   :  { %v228_v34 = vpop.permute.xlu2 %227 }
  0x82   :  { %230 = vst.msk [vmem:[#allocation2 + $0x5] sm:$0x1] %vm72_vm1, %v228_v34  ;;  %v565_v34 = vld [vmem:[%s2169_s15 + $0x40] sm:$0xff] }
  0x89   :  { %v80_v35 = vpop.permute.xlu2 %79 }
  0x8b   :  { %v135_v36 = vpop.permute.xlu1 %134 }
  0x8c   :  { %137 = vst.msk [vmem:[#allocation2 + $0x2] sm:$0x1] %vm72_vm1, %v135_v36  ;;  %v70_v37 = vpop.permute.xlu0 %69  ;;  %v625_v36 = vand.u32 4294901760, %v1703_v31 }
  0x8d   :  { %73 = vst.msk [vmem:[#allocation2] sm:$0x1] %vm72_vm1, %v70_v37  ;;  %v1721_v37 = vsub.f32 %v566_v29, %v1705_v32 }
  0x8e   :  { %83 = vst.msk [vmem:[#allocation2] sm:$0x1] %vm82_vm2, %v80_v35  ;;  %v620_v35 = vsub.f32 %v1692_v27, %v619_v30 }
  0x8f   :  { %v631_v44 = vand.u32 4294901760, %v1721_v37 }
  0x91   :  { %v175_v38 = vpop.permute.xlu2 %174  ;;  %v632_v50 = vsub.f32 %v1721_v37, %v631_v44 }
  0x93   :  { %v166_v39 = vpop.permute.xlu1 %165  ;;  %v633_v57 = vand.u32 4294901760, %v632_v50 }
  0x94   :  { %168 = vst.msk [vmem:[#allocation2 + $0x3] sm:$0x1] %vm72_vm1, %v166_v39  ;;  %v104_v40 = vpop.permute.xlu0 %103  ;;  %v564_v39 = vld [vmem:[%s2169_s15 + $0x38] sm:$0xff] }
  0x95   :  { %106 = vst.msk [vmem:[#allocation2 + $0x1] sm:$0x1] %vm72_vm1, %v104_v40 }
  0x96   :  { %177 = vst.msk [vmem:[#allocation2 + $0x3] sm:$0x1] %vm82_vm2, %v175_v38  ;;  %v1723_v38 = vand.u32 4294901760, %v565_v34 }
  0x98   :  { %v1736_v45 = vsub.f32 %v565_v34, %v1723_v38  ;;  %587 = vmatpush.msrb.mxu2 %v1723_v38 }
  0x99   :  { %v268_v41 = vpop.permute.xlu2 %267 }
  0x9b   :  { %v290_v42 = vpop.permute.xlu1 %289 }
  0x9c   :  { %292 = vst.msk [vmem:[#allocation2 + $0x7] sm:$0x1] %vm72_vm1, %v290_v42  ;;  %v259_v43 = vpop.permute.xlu0 %258  ;;  %v621_v42 = vand.u32 4294901760, %v620_v35 }
  0x9d   :  { %261 = vst.msk [vmem:[#allocation2 + $0x6] sm:$0x1] %vm72_vm1, %v259_v43  ;;  %v626_v43 = vsub.f32 %v1703_v31, %v625_v36 }
  0x9e   :  { %270 = vst.msk [vmem:[#allocation2 + $0x6] sm:$0x1] %vm82_vm2, %v268_v41  ;;  %622 = vmatpush.msrb.mxu3 %v621_v42 }
  0x9f   :  { %v627_v49 = vand.u32 4294901760, %v626_v43 }
  0xa1   :  { %v122_v47 = vpop.permute.xlu2 %121  ;;  %628 = vmatpush.msrb.mxu3 %v627_v49 }
  0xa3   :  { %v144_v51 = vpop.permute.xlu1 %143  ;;  %634 = vmatpush.msrb.mxu3 %v633_v57 }
  0xa4   :  { %146 = vst.msk [vmem:[#allocation2 + $0x2] sm:$0x1] %vm82_vm2, %v144_v51  ;;  %v113_v55 = vpop.permute.xlu0 %112  ;;  %v637_v51 = vand.u32 4294901760, %v1736_v45 }
  0xa5   :  { %115 = vst.msk [vmem:[#allocation2 + $0x1] sm:$0x1] %vm82_vm2, %v113_v55  ;;  %v562_v55 = vld [vmem:[%s2169_s15 + $0x28] sm:$0xff] }
  0xa6   :  { %124 = vst.msk [vmem:[#allocation2 + $0x1] sm:$0x1] %vm92_vm3, %v122_v47  ;;  %v1740_v47 = vand.u32 4294901760, %v564_v39  ;;  %v638_v58 = vsub.f32 %v1736_v45, %v637_v51  ;;  %v1767_v60 = vand.u32 4294901760, %v562_v55 }
  0xa8   :  { %v1754_v54 = vsub.f32 %v564_v39, %v1740_v47  ;;  %589 = vmatpush.msrb.mxu2 %v1740_v47  ;;  %v1777_v3 = vsub.f32 %v562_v55, %v1767_v60 }
  0xa9   :  { %v215_v1 = vpop.permute.xlu2 %214 }
  0xaa   :  { %v643_v62 = vand.u32 4294901760, %v1754_v54  ;;  %591 = vmatpush.msrb.mxu2 %v1750_v52 }
  0xab   :  { %v237_v5 = vpop.permute.xlu1 %236 }
  0xac   :  { %239 = vst.msk [vmem:[#allocation2 + $0x5] sm:$0x1] %vm82_vm2, %v237_v5  ;;  %v206_v8 = vpop.permute.xlu0 %205  ;;  %v644_v6 = vsub.f32 %v1754_v54, %v643_v62  ;;  %593 = vmatpush.msrb.mxu2 %v1767_v60 }
  0xad   :  { %208 = vst.msk [vmem:[#allocation2 + $0x4] sm:$0x1] %vm82_vm2, %v206_v8 }
  0xae   :  { %217 = vst.msk [vmem:[#allocation2 + $0x4] sm:$0x1] %vm92_vm3, %v215_v1  ;;  %v639_v1 = vand.u32 4294901760, %v638_v58  ;;  %595 = vmatpush.msrb.mxu2 %v1779_v4 }
  0xb0   :  { %640 = vmatpush.msrb.mxu3 %v639_v1 }
  0xb1   :  { %v308_v11 = vpop.permute.xlu2 %307 }
  0xb3   :  { %v90_v10 = vpop.permute.xlu1 %89 }
  0xb4   :  { %93 = vst.msk [vmem:[#allocation2] sm:$0x1] %vm92_vm3, %v90_v10  ;;  %v299_v12 = vpop.permute.xlu0 %298  ;;  %v655_v10 = vand.u32 4294901760, %v1777_v3 }
  0xb5   :  { %301 = vst.msk [vmem:[#allocation2 + $0x7] sm:$0x1] %vm82_vm2, %v299_v12  ;;  %v1797_v12 = vand.u32 4294901760, %v560_v7 }
  0xb6   :  { %310 = vst.msk [vmem:[#allocation2 + $0x7] sm:$0x1] %vm92_vm3, %v308_v11  ;;  %v1795_v11 = vsub.f32 %v561_v63, %v1779_v4 }
  0xb7   :  { %597 = vmatpush.msrb.mxu2 %v1797_v12 }
  0xbb   :  { %v184_v13 = vpop.permute.xlu1 %183 }
  0xbc   :  { %186 = vst.msk [vmem:[#allocation2 + $0x3] sm:$0x1] %vm92_vm3, %v184_v13  ;;  %v153_v14 = vpop.permute.xlu0 %152 }
  0xbd   :  { %155 = vst.msk [vmem:[#allocation2 + $0x2] sm:$0x1] %vm92_vm3, %v153_v14  ;;  %v645_v14 = vand.u32 4294901760, %v644_v6 }
  0xbf   :  { %646 = vmatpush.msrb.mxu3 %v645_v14 }
  0xc3   :  { %v277_v15 = vpop.permute.xlu1 %276 }
  0xc4   :  { %279 = vst.msk [vmem:[#allocation2 + $0x6] sm:$0x1] %vm92_vm3, %v277_v15  ;;  %v246_v16 = vpop.permute.xlu0 %245  ;;  %v559_v15 = vld [vmem:[%s2169_s15 + $0x10] sm:$0xff] }
  0xc5   :  { %248 = vst.msk [vmem:[#allocation2 + $0x5] sm:$0x1] %vm92_vm3, %v246_v16 }
  0xcc   :  { %v311_v17 = vld [vmem:[#allocation2] sm:$0xff] }
  0xcd   :  { %v322_v18 = vsel %vm320_vm4, %v311_v17, 0  ;;  %v651_v17 = vand.u32 4294901760, %v650_v9 }
  0xce   :  { %v344_v19 = vand.u32 4294901760, %v322_v18 }
  0xcf   :  { %652 = vmatpush.msrb.mxu3 %v651_v17 }
  0xd0   :  { %390 = vmatmul.f32.vlgmr.msra.gmra.mxu1 %v344_v19  ;;  %v345_v20 = vsub.f32 %v322_v18, %v344_v19  ;;  %v656_v18 = vsub.f32 %v1777_v3, %v655_v10 }
  0xd1   :  { %745 = vmatpush.msra.mxu1 %v1686_v25 }
  0xd2   :  { %420 = vmatmul.f32.vlgmr.msra.gmra.mxu2 %v345_v20  ;;  %v346_v21 = vand.u32 4294901760, %v345_v20  ;;  %v657_v24 = vand.u32 4294901760, %v656_v18 }
  0xd3   :  { %747 = vmatpush.msra.mxu1 %v1694_v28 }
  0xd4   :  { %447 = vmatmul.f32.vlgmr.msra.gmra.mxu3 %v346_v21  ;;  %v347_v22 = vsub.f32 %v345_v20, %v346_v21  ;;  %v1810_v20 = vsub.f32 %v560_v7, %v1797_v12 }
  0xd5   :  { %749 = vmatpush.msra.mxu1 %v1705_v32  ;;  %658 = vmatpush.msrb.mxu3 %v657_v24 }
  0xd6   :  { %v348_v23 = vand.u32 4294901760, %v347_v22  ;;  %v1815_v22 = vand.u32 4294901760, %v559_v15  ;;  %v667_v29 = vand.u32 4294901760, %v1810_v20 }
  0xd7   :  { %751 = vmatpush.msra.mxu1 %v1723_v38 }
  0xd8   :  { %349 = vmatmul.f32.vlgmr.msra.gmra.mxu0 %v348_v23  ;;  %505 = vmatmul.f32.vlgmr.msrb.gmra.mxu1 %v344_v19  ;;  %v558_v23 = vld [vmem:[%s2169_s15 + $0x8] sm:$0xff]  ;;  %v1834_v39 = vsub.f32 %v559_v15, %v1815_v22  ;;  %v668_v43 = vsub.f32 %v1810_v20, %v667_v29 }
  0xd9   :  { %700 = vmatpush.msra.mxu0 %v1692_v27  ;;  %753 = vmatpush.msra.mxu1 %v1740_v47 }
  0xda   :  { %599 = vmatpush.msrb.mxu2 %v1815_v22  ;;  %v673_v49 = vand.u32 4294901760, %v1834_v39 }
  0xdb   :  { %703 = vmatpush.msra.mxu0 %v1703_v31  ;;  %755 = vmatpush.msra.mxu1 %v1750_v52 }
  0xdc   :  { %v674_v58 = vsub.f32 %v1834_v39, %v673_v49 }
  0xdd   :  { %706 = vmatpush.msra.mxu0 %v1721_v37  ;;  %757 = vmatpush.msra.mxu1 %v1767_v60 }
  0xdf   :  { %709 = vmatpush.msra.mxu0 %v1736_v45  ;;  %759 = vmatpush.msra.mxu1 %v1779_v4 }
  0xe0   :  { %480 = vmatmul.f32.vlgmr.msrb.gmra.mxu0 %v344_v19  ;;  %v661_v19 = vand.u32 4294901760, %v1795_v11 }
  0xe1   :  { %712 = vmatpush.msra.mxu0 %v1754_v54  ;;  %761 = vmatpush.msra.mxu1 %v1797_v12 }
  0xe2   :  { %v662_v26 = vsub.f32 %v1795_v11, %v661_v19 }
  0xe3   :  { %715 = vmatpush.msra.mxu0 %v1765_v59  ;;  %763 = vmatpush.msra.mxu1 %v1815_v22 }
  0xe4   :  { %v663_v42 = vand.u32 4294901760, %v662_v26 }
  0xe5   :  { %718 = vmatpush.msra.mxu0 %v1777_v3 }
  0xe6   :  { %664 = vmatpush.msrb.mxu3 %v663_v42 }
  0xe7   :  { %721 = vmatpush.msra.mxu0 %v1795_v11 }
  0xe9   :  { %724 = vmatpush.msra.mxu0 %v1810_v20 }
  0xeb   :  { %727 = vmatpush.msra.mxu0 %v1834_v39 }
 0x14d   :  { %v391_v40 = vpop.f32.mrf.mxu1 }
 0x155   :  { %v350_v41 = vpop.f32.mrf.mxu0  ;;  %v421_v56 = vpop.f32.mrf.mxu2 }
 0x156   :  { %v351_v46 = vadd.f32 %v1320_v33, %v350_v41  ;;  %v506_v16 = vpop.f32.mrf.mxu1  ;;  %v1825_v33 = vand.u32 4294901760, %v558_v23 }
 0x157   :  { %v448_v0 = vpop.f32.mrf.mxu3 }
 0x158   :  { %v392_v53 = vadd.f32 %v391_v40, %v351_v46  ;;  %v557_v40 = vld [vmem:[%s2169_s15] sm:$0xff]  ;;  %v1844_v46 = vsub.f32 %v558_v23, %v1825_v33  ;;  %601 = vmatpush.msrb.mxu2 %v1825_v33  ;;  %765 = vmatpush.msra.mxu1 %v1825_v33  ;;  %s2172_s15 = sld [smem:[#allocation11_spill]] }
 0x159   :  { %v1850_v50 = vand.u32 4294901760, %v557_v40 }
 0x15a   :  { %v422_v61 = vadd.f32 %v421_v56, %v392_v53  ;;  %v669_v56 = vand.u32 4294901760, %v668_v43  ;;  %v679_v57 = vand.u32 4294901760, %v1844_v46  ;;  %730 = vmatpush.msra.mxu0 %v1844_v46 }
 0x15b   :  { %603 = vmatpush.msrb.mxu2 %v1850_v50  ;;  %767 = vmatpush.msra.mxu1 %v1850_v50 }
 0x15c   :  { %v449_v5 = vadd.f32 %v448_v0, %v422_v61  ;;  %v684_v61 = vsub.f32 %v557_v40, %v1850_v50  ;;  %v680_v1 = vsub.f32 %v1844_v46, %v679_v57  ;;  %670 = vmatpush.msrb.mxu3 %v669_v56 }
 0x15d   :  { %v481_v8 = vpop.f32.mrf.mxu0  ;;  %782 = vmatpush.msra.mxu2 %v619_v30 }
 0x15e   :  { %v482_v13 = vadd.f32 %v481_v8, %v449_v5  ;;  %v675_v5 = vand.u32 4294901760, %v674_v58  ;;  %v685_v6 = vand.u32 4294901760, %v684_v61  ;;  %v681_v9 = vand.u32 4294901760, %v680_v1  ;;  %733 = vmatpush.msra.mxu0 %v684_v61 }
 0x15f   :  { %786 = vmatpush.msra.mxu2 %v625_v36 }
 0x160   :  { %v1813_v21 = vadd.f32 %v506_v16, %v482_v13  ;;  %676 = vmatpush.msrb.mxu3 %v675_v5  ;;  %v686_v13 = vsub.f32 %v684_v61, %v685_v6 }
 0x161   :  { %790 = vmatpush.msra.mxu2 %v631_v44 }
 0x162   :  { %v510_v34 = vsel %vm509_vm5, %v1813_v21, 0.0  ;;  %v517_v35 = vmul.f32 %v1813_v21, %v1813_v21  ;;  %682 = vmatpush.msrb.mxu3 %v681_v9  ;;  %v687_v27 = vand.u32 4294901760, %v686_v13 }
 0x163   :  { %v511_v41 = vrot.slane %v510_v34, 4  ;;  %794 = vmatpush.msra.mxu2 %v637_v51  ;;  %v530_v51 = vld [vmem:[%s2171_s12] sm:$0x1] }
 0x164   :  { %v518_v48 = vsel %vm509_vm5, %v517_v35, 0.0  ;;  %688 = vmatpush.msrb.mxu3 %v687_v27  ;;  %v923_v35 = vld [vmem:[%s2174_s17 + $0x50] sm:$0xff] }
 0x165   :  { %v512_v53 = vadd.f32 %v511_v41, %v510_v34  ;;  %v519_v55 = vrot.slane %v518_v48, 4  ;;  %798 = vmatpush.msra.mxu2 %v643_v62  ;;  %v1914_v40 = vand.u32 4294901760, %v923_v35  ;;  %v922_v41 = vld [vmem:[%s2174_s17 + $0x48] sm:$0xff] }
 0x166   :  { %837 = vmatpush.msra.mxu3 %v1686_v25  ;;  %v1925_v46 = vand.u32 4294901760, %v922_v41 }
 0x167   :  { %v513_v63 = vrot.slane %v512_v53, 2  ;;  %v520_v0 = vadd.f32 %v519_v55, %v518_v48  ;;  %802 = vmatpush.msra.mxu2 %v649_v2  ;;  %v1923_v43 = vsub.f32 %v923_v35, %v1914_v40  ;;  %v1321_v48 = vld [vmem:[%s2175_s5] ss:$0 sm:$0xff] }
 0x168   :  { %839 = vmatpush.msra.mxu3 %v1694_v28  ;;  %v1941_v55 = vsub.f32 %v922_v41, %v1925_v46 }
 0x169   :  { %v514_v7 = vadd.f32 %v513_v63, %v512_v53  ;;  %v521_v8 = vrot.slane %v520_v0, 2  ;;  %806 = vmatpush.msra.mxu2 %v655_v10  ;;  %v981_v53 = vand.u32 4294901760, %v1923_v43 }
 0x16a   :  { %841 = vmatpush.msra.mxu3 %v1705_v32  ;;  %v987_v1 = vand.u32 4294901760, %v1941_v55 }
 0x16b   :  { %v515_v14 = vrot.slane %v514_v7, 1  ;;  %v522_v15 = vadd.f32 %v521_v8, %v520_v0  ;;  %810 = vmatpush.msra.mxu2 %v661_v19  ;;  %v982_v0 = vsub.f32 %v1923_v43, %v981_v53  ;;  %v919_v8 = vld [vmem:[%s2174_s17 + $0x30] sm:$0xff] }
 0x16c   :  { %843 = vmatpush.msra.mxu3 %v1723_v38  ;;  %v988_v13 = vsub.f32 %v1941_v55, %v987_v1 }
 0x16d   :  { %v516_v30 = vadd.f32 %v515_v14, %v514_v7  ;;  %v523_v16 = vrot.slane %v522_v15, 1  ;;  %814 = vmatpush.msra.mxu2 %v667_v29  ;;  %v983_v9 = vand.u32 4294901760, %v982_v0 }
 0x16e   :  { %845 = vmatpush.msra.mxu3 %v1740_v47 }
 0x16f   :  { %v524_v17 = vadd.f32 %v523_v16, %v522_v15  ;;  %v525_v18 = vmul.f32 0.125, %v516_v30  ;;  %818 = vmatpush.msra.mxu2 %v673_v49  ;;  %v921_v49 = vld [vmem:[%s2174_s17 + $0x40] sm:$0xff]  ;;  %v1970_v15 = vand.u32 4294901760, %v919_v8  ;;  %v918_v16 = vld [vmem:[%s2174_s17 + $0x28] sm:$0xff] }
 0x170   :  { %847 = vmatpush.msra.mxu3 %v1750_v52  ;;  %v1943_v56 = vand.u32 4294901760, %v921_v49 }
 0x171   :  { %v526_v31 = vmul.f32 0.125, %v524_v17  ;;  %v527_v36 = vmul.f32 %v525_v18, %v525_v18  ;;  %822 = vmatpush.msra.mxu2 %v679_v57  ;;  %v920_v57 = vld [vmem:[%s2174_s17 + $0x38] sm:$0xff] }
 0x172   :  { %849 = vmatpush.msra.mxu3 %v1767_v60  ;;  %v543_v60 = vld [vmem:[%s2172_s15] sm:$0x1]  ;;  %v1956_v5 = vsub.f32 %v921_v49, %v1943_v56  ;;  %v1960_v7 = vand.u32 4294901760, %v920_v57 }
 0x173   :  { %v528_v37 = vsub.f32 %v526_v31, %v527_v36  ;;  %826 = vmatpush.msra.mxu2 %v685_v6  ;;  %v1985_v36 = vsub.f32 %v919_v8, %v1970_v15 }
 0x174   :  { %851 = vmatpush.msra.mxu3 %v1779_v4  ;;  %v993_v14 = vand.u32 4294901760, %v1956_v5  ;;  %v1974_v30 = vsub.f32 %v920_v57, %v1960_v7 }
 0x175   :  { %v529_v44 = vmax.f32 %v528_v37, 0.0  ;;  %v1987_v37 = vand.u32 4294901760, %v918_v16 }
 0x176   :  { %853 = vmatpush.msra.mxu3 %v1797_v12  ;;  %v555_v12 = vld [vmem:[%s2173_s24] sm:$0xff]  ;;  %v994_v31 = vsub.f32 %v1956_v5, %v993_v14 }
 0x177   :  { %v531_v25 = vadd.f32 1e-05, %v529_v44 }
 0x178   :  { %855 = vmatpush.msra.mxu3 %v1815_v22 }
 0x179   :  { %1323 = vrsqrt.f32 %v531_v25  ;;  %vm538_vm7 = vweird.f32 %v531_v25 }
 0x17a   :  { %857 = vmatpush.msra.mxu3 %v1825_v33 }
 0x17c   :  { %859 = vmatpush.msra.mxu3 %v1850_v50 }
 0x17f   :  { %v1324_v28 = vpop.eup %1323 }
 0x180   :  { %v533_v32 = vmul.f32 %v1324_v28, %v531_v25  ;;  %vm539_vm6 = vweird.f32 %v1324_v28  ;;  %v999_v25 = vand.u32 4294901760, %v1974_v30 }
 0x181   :  { %vm540_vm8 = vmor %vm538_vm7, %vm539_vm6 }
 0x182   :  { %v534_v38 = vmul.f32 %v1324_v28, %v533_v32 }
 0x184   :  { %v535_v45 = vmul.f32 0.5, %v534_v38  ;;  %v995_v38 = vand.u32 4294901760, %v994_v31 }
 0x186   :  { %v536_v47 = vsub.f32 1.5, %v535_v45  ;;  %v1005_v45 = vand.u32 4294901760, %v1985_v36 }
 0x188   :  { %v537_v52 = vmul.f32 %v1324_v28, %v536_v47  ;;  %v1997_v47 = vsub.f32 %v918_v16, %v1987_v37 }
 0x18a   :  { %v541_v54 = vsel %vm540_vm8, %v1324_v28, %v537_v52  ;;  %v917_v28 = vld [vmem:[%s2174_s17 + $0x20] sm:$0xff] }
 0x18b   :  { %v542_v59 = vmul.f32 %v541_v54, %v530_v51  ;;  %v1999_v51 = vand.u32 4294901760, %v917_v28  ;;  %v1000_v54 = vsub.f32 %v1974_v30, %v999_v25 }
 0x18d   :  { %v544_v62 = vmul.f32 %v542_v59, %v525_v18  ;;  %v547_v2 = vperm.slane %v542_v59, 0  ;;  %v989_v18 = vand.u32 4294901760, %v988_v13  ;;  %v916_v59 = vld [vmem:[%s2174_s17 + $0x18] sm:$0xff] }
 0x18f   :  { %v545_v3 = vsub.f32 %v543_v60, %v544_v62  ;;  %v549_v4 = vmul.f32 %v547_v2, %v1813_v21  ;;  %v924_v21 = vld [vmem:[%s2174_s17 + $0x58] sm:$0xff]  ;;  %v1006_v62 = vsub.f32 %v1985_v36, %v1005_v45  ;;  %v1011_v2 = vand.u32 4294901760, %v1997_v47 }
 0x190   :  { %v1906_v34 = vand.u32 4294901760, %v924_v21 }
 0x191   :  { %v551_v10 = vperm.slane %v545_v3, 0  ;;  %v2015_v3 = vsub.f32 %v917_v28, %v1999_v51 }
 0x192   :  { %v1912_v39 = vsub.f32 %v924_v21, %v1906_v34  ;;  %937 = vmatpush.msrb.mxu0 %v1906_v34 }
 0x193   :  { %v553_v11 = vadd.f32 %v551_v10, %v549_v4  ;;  %v2017_v4 = vand.u32 4294901760, %v916_v59 }
 0x194   :  { %v975_v42 = vand.u32 4294901760, %v1912_v39  ;;  %939 = vmatpush.msrb.mxu0 %v1914_v40 }
 0x195   :  { %v554_v19 = vmax.f32 %v553_v11, 0.0  ;;  %v1001_v11 = vand.u32 4294901760, %v1000_v54 }
 0x196   :  { %v976_v50 = vsub.f32 %v1912_v39, %v975_v42  ;;  %941 = vmatpush.msrb.mxu0 %v1925_v46 }
 0x197   :  { %v556_v20 = vmul.f32 %v555_v12, %v554_v19  ;;  %v915_v12 = vld [vmem:[%s2174_s17 + $0x10] sm:$0xff] }
 0x198   :  { %v977_v63 = vand.u32 4294901760, %v976_v50  ;;  %943 = vmatpush.msrb.mxu0 %v1943_v56 }
 0x199   :  { %v574_v22 = vsel %vm509_vm5, %v556_v20, 0  ;;  %v1007_v20 = vand.u32 4294901760, %v1006_v62 }
 0x19a   :  { %v604_v23 = vand.u32 4294901760, %v574_v22  ;;  %978 = vmatpush.msrb.mxu1 %v977_v63  ;;  %945 = vmatpush.msrb.mxu0 %v1960_v7 }
 0x19c   :  { %690 = vmatmul.f32.vlgmr.msrb.gmra.mxu3 %v604_v23  ;;  %v605_v24 = vsub.f32 %v574_v22, %v604_v23  ;;  %984 = vmatpush.msrb.mxu1 %v983_v9  ;;  %v1012_v22 = vsub.f32 %v1997_v47, %v1011_v2 }
 0x19d   :  { %1101 = vmatpush.msrb.mxu3 %v1906_v34  ;;  %947 = vmatpush.msrb.mxu0 %v1970_v15 }
 0x19e   :  { %736 = vmatmul.f32.vlgmr.msra.gmra.mxu0 %v605_v24  ;;  %v606_v26 = vand.u32 4294901760, %v605_v24  ;;  %990 = vmatpush.msrb.mxu1 %v989_v18  ;;  %v1013_v21 = vand.u32 4294901760, %v1012_v22 }
 0x19f   :  { %1103 = vmatpush.msrb.mxu3 %v1914_v40  ;;  %949 = vmatpush.msrb.mxu0 %v1987_v37 }
 0x1a0   :  { %771 = vmatmul.f32.vlgmr.msra.gmra.mxu1 %v606_v26  ;;  %v607_v29 = vsub.f32 %v605_v24, %v606_v26  ;;  %v2030_v24 = vsub.f32 %v916_v59, %v2017_v4 }
 0x1a1   :  { %1105 = vmatpush.msrb.mxu3 %v1925_v46  ;;  %996 = vmatpush.msrb.mxu1 %v995_v38 }
 0x1a2   :  { %v608_v33 = vand.u32 4294901760, %v607_v29  ;;  %951 = vmatpush.msrb.mxu0 %v1999_v51  ;;  %v2035_v29 = vand.u32 4294901760, %v915_v12  ;;  %v1023_v41 = vand.u32 4294901760, %v2030_v24 }
 0x1a3   :  { %1107 = vmatpush.msrb.mxu3 %v1943_v56  ;;  %1002 = vmatpush.msrb.mxu1 %v1001_v11 }
 0x1a4   :  { %609 = vmatmul.f32.vlgmr.msrb.gmra.mxu2 %v608_v33  ;;  %861 = vmatmul.f32.vlgmr.msra.gmra.mxu3 %v604_v23  ;;  %v914_v33 = vld [vmem:[%s2174_s17 + $0x8] sm:$0xff]  ;;  %v2054_v57 = vsub.f32 %v915_v12, %v2035_v29  ;;  %v1024_v0 = vsub.f32 %v2030_v24, %v1023_v41 }
 0x1a5   :  { %1056 = vmatpush.msrb.mxu2 %v1912_v39  ;;  %1109 = vmatpush.msrb.mxu3 %v1960_v7 }
 0x1a6   :  { %953 = vmatpush.msrb.mxu0 %v2017_v4  ;;  %1008 = vmatpush.msrb.mxu1 %v1007_v20  ;;  %v1029_v9 = vand.u32 4294901760, %v2054_v57 }
 0x1a7   :  { %1059 = vmatpush.msrb.mxu2 %v1923_v43  ;;  %1111 = vmatpush.msrb.mxu3 %v1970_v15 }
 0x1a8   :  { %955 = vmatpush.msrb.mxu0 %v2035_v29  ;;  %1014 = vmatpush.msrb.mxu1 %v1013_v21  ;;  %v1030_v31 = vsub.f32 %v2054_v57, %v1029_v9 }
 0x1a9   :  { %1062 = vmatpush.msrb.mxu2 %v1941_v55  ;;  %1113 = vmatpush.msrb.mxu3 %v1987_v37 }
 0x1ab   :  { %1065 = vmatpush.msrb.mxu2 %v1956_v5  ;;  %1115 = vmatpush.msrb.mxu3 %v1999_v51 }
 0x1ac   :  { %828 = vmatmul.f32.vlgmr.msra.gmra.mxu2 %v604_v23  ;;  %v1017_v23 = vand.u32 4294901760, %v2015_v3 }
 0x1ad   :  { %1068 = vmatpush.msrb.mxu2 %v1974_v30  ;;  %1117 = vmatpush.msrb.mxu3 %v2017_v4 }
 0x1ae   :  { %v1018_v35 = vsub.f32 %v2015_v3, %v1017_v23 }
 0x1af   :  { %1071 = vmatpush.msrb.mxu2 %v1985_v36  ;;  %1119 = vmatpush.msrb.mxu3 %v2035_v29 }
 0x1b0   :  { %v1019_v63 = vand.u32 4294901760, %v1018_v35 }
 0x1b1   :  { %1074 = vmatpush.msrb.mxu2 %v1997_v47 }
 0x1b2   :  { %1020 = vmatpush.msrb.mxu1 %v1019_v63 }
 0x1b3   :  { %1077 = vmatpush.msrb.mxu2 %v2015_v3 }
 0x1b5   :  { %1080 = vmatpush.msrb.mxu2 %v2030_v24 }
 0x1b7   :  { %1083 = vmatpush.msrb.mxu2 %v2054_v57 }
 0x21b   :  { %v737_v17 = vpop.f32.mrf.mxu0 }
 0x21d   :  { %v772_v32 = vpop.f32.mrf.mxu1 }
 0x21f   :  { %v691_v58 = vpop.f32.mrf.mxu3 }
 0x227   :  { %v610_v61 = vpop.f32.mrf.mxu2  ;;  %v862_v19 = vpop.f32.mrf.mxu3 }
 0x228   :  { %v611_v6 = vadd.f32 %v1321_v48, %v610_v61  ;;  %v2045_v48 = vand.u32 4294901760, %v914_v33 }
 0x22a   :  { %v692_v27 = vadd.f32 %v691_v58, %v611_v6  ;;  %v913_v58 = vld [vmem:[%s2174_s17] sm:$0xff]  ;;  %v2064_v6 = vsub.f32 %v914_v33, %v2045_v48  ;;  %957 = vmatpush.msrb.mxu0 %v2045_v48  ;;  %1121 = vmatpush.msrb.mxu3 %v2045_v48 }
 0x22b   :  { %v2070_v13 = vand.u32 4294901760, %v913_v58 }
 0x22c   :  { %v738_v44 = vadd.f32 %v737_v17, %v692_v27  ;;  %v1025_v17 = vand.u32 4294901760, %v1024_v0  ;;  %v1035_v18 = vand.u32 4294901760, %v2064_v6  ;;  %1086 = vmatpush.msrb.mxu2 %v2064_v6 }
 0x22d   :  { %959 = vmatpush.msrb.mxu0 %v2070_v13  ;;  %1123 = vmatpush.msrb.mxu3 %v2070_v13 }
 0x22e   :  { %v773_v52 = vadd.f32 %v772_v32, %v738_v44  ;;  %v1040_v44 = vsub.f32 %v913_v58, %v2070_v13  ;;  %v1036_v38 = vsub.f32 %v2064_v6, %v1035_v18  ;;  %1026 = vmatpush.msrb.mxu1 %v1025_v17 }
 0x22f   :  { %v829_v60 = vpop.f32.mrf.mxu2  ;;  %1138 = vmatpush.msra.mxu0 %v975_v42 }
 0x230   :  { %v830_v10 = vadd.f32 %v829_v60, %v773_v52  ;;  %v1031_v52 = vand.u32 4294901760, %v1030_v31  ;;  %v1041_v54 = vand.u32 4294901760, %v1040_v44  ;;  %v1037_v62 = vand.u32 4294901760, %v1036_v38  ;;  %1089 = vmatpush.msrb.mxu2 %v1040_v44 }
 0x231   :  { %1142 = vmatpush.msra.mxu0 %v981_v53 }
 0x232   :  { %v2033_v26 = vadd.f32 %v862_v19, %v830_v10  ;;  %1032 = vmatpush.msrb.mxu1 %v1031_v52  ;;  %v1042_v10 = vsub.f32 %v1040_v44, %v1041_v54 }
 0x233   :  { %1146 = vmatpush.msra.mxu0 %v987_v1 }
 0x234   :  { %v865_v49 = vsel %vm509_vm5, %v2033_v26, 0.0  ;;  %v872_v50 = vmul.f32 %v2033_v26, %v2033_v26  ;;  %1038 = vmatpush.msrb.mxu1 %v1037_v62  ;;  %v1043_v39 = vand.u32 4294901760, %v1042_v10 }
 0x235   :  { %v866_v61 = vrot.slane %v865_v49, 4  ;;  %1150 = vmatpush.msra.mxu0 %v993_v14  ;;  %v885_v14 = vld [vmem:[%s2176_s14] sm:$0x1] }
 0x236   :  { %v873_v8 = vsel %vm509_vm5, %v872_v50, 0.0  ;;  %1044 = vmatpush.msrb.mxu1 %v1043_v39 }
 0x237   :  { %v867_v27 = vadd.f32 %v866_v61, %v865_v49  ;;  %v874_v16 = vrot.slane %v873_v8, 4  ;;  %1154 = vmatpush.msra.mxu0 %v999_v25 }
 0x238   :  { %1193 = vmatpush.msra.mxu1 %v1906_v34 }
 0x239   :  { %v868_v28 = vrot.slane %v867_v27, 2  ;;  %v875_v32 = vadd.f32 %v874_v16, %v873_v8  ;;  %1158 = vmatpush.msra.mxu0 %v1005_v45 }
 0x23a   :  { %1195 = vmatpush.msra.mxu1 %v1914_v40 }
 0x23b   :  { %v869_v59 = vadd.f32 %v868_v28, %v867_v27  ;;  %v876_v60 = vrot.slane %v875_v32, 2  ;;  %1162 = vmatpush.msra.mxu0 %v1011_v2 }
 0x23c   :  { %1197 = vmatpush.msra.mxu1 %v1925_v46 }
 0x23d   :  { %v870_v11 = vrot.slane %v869_v59, 1  ;;  %v877_v12 = vadd.f32 %v876_v60, %v875_v32  ;;  %1166 = vmatpush.msra.mxu0 %v1017_v23 }
 0x23e   :  { %1199 = vmatpush.msra.mxu1 %v1943_v56 }
 0x23f   :  { %v871_v42 = vadd.f32 %v870_v11, %v869_v59  ;;  %v878_v19 = vrot.slane %v877_v12, 1  ;;  %1170 = vmatpush.msra.mxu0 %v1023_v41 }
 0x240   :  { %1201 = vmatpush.msra.mxu1 %v1960_v7 }
 0x241   :  { %v879_v20 = vadd.f32 %v878_v19, %v877_v12  ;;  %v880_v22 = vmul.f32 0.125, %v871_v42  ;;  %1174 = vmatpush.msra.mxu0 %v1029_v9 }
 0x242   :  { %1203 = vmatpush.msra.mxu1 %v1970_v15 }
 0x243   :  { %v881_v43 = vmul.f32 0.125, %v879_v20  ;;  %v882_v53 = vmul.f32 %v880_v22, %v880_v22  ;;  %1178 = vmatpush.msra.mxu0 %v1035_v18 }
 0x244   :  { %1205 = vmatpush.msra.mxu1 %v1987_v37  ;;  %v898_v37 = vld [vmem:[%s2177_s11] sm:$0x1] }
 0x245   :  { %v883_v55 = vsub.f32 %v881_v43, %v882_v53  ;;  %1182 = vmatpush.msra.mxu0 %v1041_v54 }
 0x246   :  { %1207 = vmatpush.msra.mxu1 %v1999_v51 }
 0x247   :  { %v884_v1 = vmax.f32 %v883_v55, 0.0 }
 0x248   :  { %1209 = vmatpush.msra.mxu1 %v2017_v4  ;;  %v1291_v4 = vld [vmem:[%s2173_s24 + $0x8] sm:$0xff] }
 0x249   :  { %v886_v34 = vadd.f32 1e-05, %v884_v1 }
 0x24a   :  { %1211 = vmatpush.msra.mxu1 %v2035_v29 }
 0x24b   :  { %1325 = vrsqrt.f32 %v886_v34  ;;  %vm893_vm10 = vweird.f32 %v886_v34 }
 0x24c   :  { %1213 = vmatpush.msra.mxu1 %v2045_v48 }
 0x24e   :  { %1215 = vmatpush.msra.mxu1 %v2070_v13 }
 0x251   :  { %v1326_v40 = vpop.eup %1325 }
 0x252   :  { %v888_v46 = vmul.f32 %v1326_v40, %v886_v34  ;;  %vm894_vm9 = vweird.f32 %v1326_v40 }
 0x253   :  { %vm895_vm11 = vmor %vm893_vm10, %vm894_vm9 }
 0x254   :  { %v889_v56 = vmul.f32 %v1326_v40, %v888_v46 }
 0x256   :  { %v890_v5 = vmul.f32 0.5, %v889_v56 }
 0x258   :  { %v891_v7 = vsub.f32 1.5, %v890_v5 }
 0x25a   :  { %v892_v15 = vmul.f32 %v1326_v40, %v891_v7 }
 0x25c   :  { %v896_v30 = vsel %vm895_vm11, %v1326_v40, %v892_v15 }
 0x25d   :  { %v897_v36 = vmul.f32 %v896_v30, %v885_v14 }
 0x25f   :  { %v899_v25 = vmul.f32 %v897_v36, %v880_v22  ;;  %v902_v45 = vperm.slane %v897_v36, 0 }
 0x261   :  { %v900_v47 = vsub.f32 %v898_v37, %v899_v25  ;;  %v904_v51 = vmul.f32 %v902_v45, %v2033_v26  ;;  %v1322_v26 = vld [vmem:[#allocation3] ss:$0 sm:$0xff] }
 0x263   :  { %v906_v2 = vperm.slane %v900_v47, 0 }
 0x265   :  { %v908_v3 = vadd.f32 %v906_v2, %v904_v51 }
 0x267   :  { %v909_v23 = vmax.f32 %v908_v3, 0.0 }
 0x269   :  { %v912_v24 = vmul.f32 %v1291_v4, %v909_v23 }
 0x26b   :  { %v930_v29 = vsel %vm509_vm5, %v912_v24, 0 }
 0x26c   :  { %v960_v33 = vand.u32 4294901760, %v930_v29 }
 0x26e   :  { %1046 = vmatmul.f32.vlgmr.msrb.gmra.mxu1 %v960_v33  ;;  %v961_v21 = vsub.f32 %v930_v29, %v960_v33 }
 0x270   :  { %1092 = vmatmul.f32.vlgmr.msrb.gmra.mxu2 %v961_v21  ;;  %v962_v35 = vand.u32 4294901760, %v961_v21 }
 0x272   :  { %1127 = vmatmul.f32.vlgmr.msrb.gmra.mxu3 %v962_v35  ;;  %v963_v41 = vsub.f32 %v961_v21, %v962_v35 }
 0x274   :  { %v964_v48 = vand.u32 4294901760, %v963_v41 }
 0x276   :  { %965 = vmatmul.f32.vlgmr.msrb.gmra.mxu0 %v964_v48  ;;  %1217 = vmatmul.f32.vlgmr.msra.gmra.mxu1 %v960_v33 }
 0x27e   :  { %1184 = vmatmul.f32.vlgmr.msra.gmra.mxu0 %v960_v33 }
 0x2eb   :  { %v1047_v49 = vpop.f32.mrf.mxu1 }
 0x2f3   :  { %v966_v50 = vpop.f32.mrf.mxu0  ;;  %v1093_v61 = vpop.f32.mrf.mxu2 }
 0x2f4   :  { %v967_v57 = vadd.f32 %v1322_v26, %v966_v50  ;;  %v1218_v13 = vpop.f32.mrf.mxu1 }
 0x2f5   :  { %v1128_v0 = vpop.f32.mrf.mxu3 }
 0x2f6   :  { %v1048_v58 = vadd.f32 %v1047_v49, %v967_v57 }
 0x2f8   :  { %v1094_v63 = vadd.f32 %v1093_v61, %v1048_v58 }
 0x2fa   :  { %v1129_v6 = vadd.f32 %v1128_v0, %v1094_v63 }
 0x2fb   :  { %v1185_v8 = vpop.f32.mrf.mxu0 }
 0x2fc   :  { %v1186_v9 = vadd.f32 %v1185_v8, %v1129_v6 }
 0x2fe   :  { %v1219_v27 = vadd.f32 %v1218_v13, %v1186_v9 }
 0x300   :  { %1222 = vst.msk [vmem:[%s2178_s27] sm:$0xff] %vm1221_vm12, %v1219_v27 }
 0x301   :  { %1227 = vsyncpa [#allocation5], 1 }

</bundles_post_ra>
